<compile_context>
chip_gen: v7x
topology: tpu7x:2x2x1
jax: 0.10.0
libtpu: 0.0.40
codegen_flags: <defaults>
</compile_context>

<pallas_src>
import functools

import jax
import jax.numpy as jnp
from jax.experimental import pallas as pl
from jax.experimental.pallas import tpu as pltpu

_BN_EPS = 1e-5


def _round_up(x, m):
    return (x + m - 1) // m * m


def _valid_range(phase, d, n, s):
    """Rows/cols of a stride phase that hold real (non-halo) pixels."""
    lo = max(0, -(-(d - phase) // s))        # ceil((d - phase) / s), clamped at 0
    hi = (d + n - 1 - phase) // s            # inclusive
    return lo, hi - lo + 1


# ------------------------------ Pallas kernel --------------------------------

def _bottleneck_kernel(x_ref, w1_ref, b1_ref, w2_ref, b2_ref, w3_ref, b3_ref,
                       *rest, s, d, H, W, Ho, Wo, has_down):
    """Fused bottleneck for one image (grid iterates over the batch).

    x_ref : s == 1 -> (1, H, W, Cin) bf16, raw (unpadded) NHWC image.
            s  > 1 -> (s*s, Hph, Wph, Cin) bf16, stride-phase split of the
                      spatially zero-padded image (built once on the host).
    w*_ref: bf16 weights with inference-mode BN scale folded in; mid / output
            channel dims lane-padded with zeros (Cp / Coutp).
    b*_ref: (1, C) f32 folded BN biases (zero in the padded channels).
    rest  : [wd_ref, bd_ref,] out_ref, h1_ref (VMEM scratch).
    """
    if has_down:
        wd_ref, bd_ref, out_ref, h1_ref = rest
    else:
        out_ref, h1_ref = rest

    Cin, Cp = w1_ref.shape

    # --- conv1 (1x1) + bn1 + relu ---------------------------------------------
    # The scratch holds h1 in a frame that already contains conv2's d-pixel zero
    # halo: zero it once, then write conv1 of the *valid* pixels of every stride
    # phase at the right offset (no per-phase interior masks, no biased halo).
    h1_ref[...] = jnp.zeros_like(h1_ref)
    for py in range(s):
        for px in range(s):
            p = py * s + px
            i0, nv = _valid_range(py, d, H, s)
            j0, nw = _valid_range(px, d, W, s)
            if s == 1:
                xin = x_ref[0]                                  # (H, W, Cin)
            else:
                xin = x_ref[p, i0:i0 + nv, j0:j0 + nw, :]       # real pixels only
            a = jnp.dot(xin.reshape(nv * nw, Cin), w1_ref[...],
                        preferred_element_type=jnp.float32)
            a = jnp.maximum(a + b1_ref[...], 0.0).astype(jnp.bfloat16)
            h1_ref[p, i0:i0 + nv, j0:j0 + nw, :] = a.reshape(nv, nw, Cp)

    # --- conv2 (3x3, stride s, dilation d) + bn2 + relu -------------------------
    # Gather the 9 taps once into a K-stacked operand and run ONE MXU matmul
    # (K = 9*Cp) instead of 9 small-K dots + 8 f32 accumulator round-trips.
    taps = []
    for ky in range(3):
        for kx in range(3):
            py, oy = (ky * d) % s, (ky * d) // s
            px, ox = (kx * d) % s, (kx * d) // s
            taps.append(h1_ref[py * s + px, oy:oy + Ho, ox:ox + Wo, :])
    stacked = jnp.concatenate(taps, axis=-1).reshape(Ho * Wo, 9 * Cp)
    h2 = jnp.dot(stacked, w2_ref[...], preferred_element_type=jnp.float32)
    h2 = jnp.maximum(h2 + b2_ref[...], 0.0).astype(jnp.bfloat16)

    # --- conv3 (1x1) + bn3 + residual + relu ------------------------------------
    y = jnp.dot(h2, w3_ref[...], preferred_element_type=jnp.float32) + b3_ref[...]
    if s == 1:
        xs = x_ref[0].reshape(Ho * Wo, Cin)
    else:
        p0, o0 = d % s, d // s
        xs = x_ref[p0 * s + p0, o0:o0 + Ho, o0:o0 + Wo, :].reshape(Ho * Wo, Cin)
    if has_down:
        y = y + jnp.dot(xs, wd_ref[...], preferred_element_type=jnp.float32)
        y = y + bd_ref[...]
    else:
        # TODO(synk): identity shortcut adds the bf16-cast input; keep x in f32
        #             end-to-end if downstream accuracy is sensitive.
        y = y + xs.astype(jnp.float32)           # identity: Cin == Cout, s == 1

    out_ref[0] = jnp.maximum(y, 0.0).astype(out_ref.dtype)


# ------------------------------ host-side glue --------------------------------

def _fold_bn(gamma, beta, mean, var):
    scale = gamma / jnp.sqrt(var + _BN_EPS)
    return scale, beta - mean * scale


def _stride_phases(x_nhwc, s, d):
    """Zero-pad spatially by d and split into s*s stride phases (s > 1 only)."""
    n, h, w, c = x_nhwc.shape
    xp = jnp.pad(x_nhwc, ((0, 0), (d, d), (d, d), (0, 0)))
    hp, wp = h + 2 * d, w + 2 * d
    hph = pl.cdiv(hp, s)
    wph = _round_up(pl.cdiv(wp, s), 16)          # bf16 native tile is (16, 128)
    phases = []
    for py in range(s):
        for px in range(s):
            ph = xp[:, py::s, px::s, :]
            phases.append(jnp.pad(ph, ((0, 0), (0, hph - ph.shape[1]),
                                       (0, wph - ph.shape[2]), (0, 0))))
    xph = jnp.stack(phases, axis=1)
    return xph.reshape(n * s * s, hph, wph, c), hph, wph


def bottleneck_forward(params, x_nchw, stride=1, dilation=1):
    s, d = stride, dilation
    x = jnp.transpose(x_nchw, (0, 2, 3, 1)).astype(jnp.bfloat16)   # NHWC, bf16
    n, h, w, cin = x.shape
    c = params["conv1_w"].shape[0]
    cout = params["conv3_w"].shape[0]
    ho = (h - 1) // s + 1
    wo = (w - 1) // s + 1
    has_down = "down_w" in params

    # Lane padding: mid channels always padded to a multiple of 128 (weight-side
    # only; the zero channels stay exactly zero through relu), output channels
    # padded only on the projection path (identity needs Cout == Cin unpadded).
    cp = _round_up(c, 128)
    coutp = _round_up(cout, 128) if has_down else cout

    # Fold inference-mode BN into the conv weights (scale) + a per-channel bias.
    s1, b1 = _fold_bn(*params["bn1"])
    s2, b2 = _fold_bn(*params["bn2"])
    s3, b3 = _fold_bn(*params["bn3"])

    def padw(a, shape):
        return jnp.pad(a, [(0, t - u) for u, t in zip(a.shape, shape)])

    w1 = padw(params["conv1_w"].reshape(c, cin).T * s1[None, :],
              (cin, cp)).astype(jnp.bfloat16)
    w2 = jnp.transpose(params["conv2_w"], (2, 3, 1, 0)) * s2        # HWIO * scale
    w2 = padw(w2.reshape(9, c, c), (9, cp, cp)).reshape(9 * cp, cp).astype(jnp.bfloat16)
    w3 = padw(params["conv3_w"].reshape(cout, c).T * s3[None, :],
              (cp, coutp)).astype(jnp.bfloat16)
    b1p = padw(b1, (cp,)).reshape(1, cp).astype(jnp.float32)
    b2p = padw(b2, (cp,)).reshape(1, cp).astype(jnp.float32)
    b3p = padw(b3, (coutp,)).reshape(1, coutp).astype(jnp.float32)

    if s == 1:
        # No host-side pad / phase split: the d-pixel zero border lives in the
        # zero-initialised VMEM scratch inside the kernel (saves one full HBM
        # read+write of the activation; biggest relative win on v5e).
        x_in = x
        P, hps, wps = 1, h + 2 * d, w + 2 * d
        x_spec = pl.BlockSpec((1, h, w, cin), lambda i: (i, 0, 0, 0))
    else:
        x_in, hph, wph = _stride_phases(x, s, d)
        P, hps, wps = s * s, hph, wph
        x_spec = pl.BlockSpec((P, hph, wph, cin), lambda i: (i, 0, 0, 0))

    in_specs = [
        x_spec,
        pl.BlockSpec((cin, cp), lambda i: (0, 0)),
        pl.BlockSpec((1, cp), lambda i: (0, 0)),
        pl.BlockSpec((9 * cp, cp), lambda i: (0, 0, )[:2]),
        pl.BlockSpec((1, cp), lambda i: (0, 0)),
        pl.BlockSpec((cp, coutp), lambda i: (0, 0)),
        pl.BlockSpec((1, coutp), lambda i: (0, 0)),
    ]
    args = [x_in, w1, b1p, w2, b2p, w3, b3p]
    if has_down:
        sd_, bd_ = _fold_bn(*params["down_bn"])
        wd = padw(params["down_w"].reshape(cout, cin).T * sd_[None, :],
                  (cin, coutp)).astype(jnp.bfloat16)
        bdp = padw(bd_, (coutp,)).reshape(1, coutp).astype(jnp.float32)
        in_specs += [pl.BlockSpec((cin, coutp), lambda i: (0, 0)),
                     pl.BlockSpec((1, coutp), lambda i: (0, 0))]
        args += [wd, bdp]

    flops = 2 * n * (h * w * cin * cp + ho * wo * 9 * cp * cp
                     + ho * wo * cp * coutp
                     + (ho * wo * cin * coutp if has_down else 0))
    bytes_accessed = (x_in.size * x_in.dtype.itemsize
                      + sum(a.size * a.dtype.itemsize for a in args[1:])
                      + n * ho * wo * coutp * 2)

    kernel = functools.partial(_bottleneck_kernel, s=s, d=d, H=h, W=w,
                               Ho=ho, Wo=wo, has_down=has_down)
    out = pl.pallas_call(
        kernel,
        out_shape=jax.ShapeDtypeStruct((n, ho * wo, coutp), jnp.bfloat16),
        grid_spec=pltpu.PrefetchScalarGridSpec(
            num_scalar_prefetch=0,
            grid=(n,),
            in_specs=in_specs,
            out_specs=pl.BlockSpec((1, ho * wo, coutp), lambda i: (i, 0, 0)),
            scratch_shapes=[pltpu.VMEM((P, hps, wps, cp), jnp.bfloat16)]),
        compiler_params=pltpu.CompilerParams(
            dimension_semantics=("parallel",),
            vmem_limit_bytes=64 * 1024 * 1024),
        cost_estimate=pl.CostEstimate(flops=flops, transcendentals=0,
                                      bytes_accessed=bytes_accessed),
    )(*args)

    out = out.reshape(n, ho, wo, coutp)
    if coutp != cout:
        out = out[..., :cout]
    return jnp.transpose(out, (0, 3, 1, 2))      # back to NCHW (bf16)


# ------------------------------ params / reference ----------------------------

def init_bottleneck_params(key, in_channels, channels, stride=1, dilation=1):
    out_channels = 4 * channels
    keys = jax.random.split(key, 8)

    def conv_w(k, co, ci, kh, kw):
        return 0.1 * jax.random.normal(k, (co, ci, kh, kw), jnp.float32)

    def bn_p(k, ch):
        k1, k2, k3, k4 = jax.random.split(k, 4)
        gamma = 1.0 + 0.1 * jax.random.normal(k1, (ch,), jnp.float32)
        beta = 0.1 * jax.random.normal(k2, (ch,), jnp.float32)
        mean = 0.1 * jax.random.normal(k3, (ch,), jnp.float32)
        var = jax.random.uniform(k4, (ch,), jnp.float32, minval=0.5, maxval=1.5)
        return gamma, beta, mean, var

    params = {
        "conv1_w": conv_w(keys[0], channels, in_channels, 1, 1),
        "bn1": bn_p(keys[1], channels),
        "conv2_w": conv_w(keys[2], channels, channels, 3, 3),
        "bn2": bn_p(keys[3], channels),
        "conv3_w": conv_w(keys[4], out_channels, channels, 1, 1),
        "bn3": bn_p(keys[5], out_channels),
    }
    if stride != 1 or in_channels != out_channels:
        params["down_w"] = conv_w(keys[6], out_channels, in_channels, 1, 1)
        params["down_bn"] = bn_p(keys[7], out_channels)
    return params


def bottleneck_reference(params, x_nchw, stride=1, dilation=1):
    x = jnp.transpose(x_nchw, (0, 2, 3, 1)).astype(jnp.float32)

    def bn(y, p):
        g, b, m, v = p
        return g * (y - m) / jnp.sqrt(v + _BN_EPS) + b

    def conv1x1(y, wgt, s=1):
        y = y[:, ::s, ::s, :]
        return jnp.einsum('nhwc,oc->nhwo', y,
                          wgt.reshape(wgt.shape[0], wgt.shape[1]))

    out = jax.nn.relu(bn(conv1x1(x, params["conv1_w"]), params["bn1"]))
    w2 = jnp.transpose(params["conv2_w"], (2, 3, 1, 0))   # HWIO
    out = jax.lax.conv_general_dilated(
        out, w2, window_strides=(stride, stride),
        padding=[(dilation, dilation), (dilation, dilation)],
        rhs_dilation=(dilation, dilation),
        dimension_numbers=('NHWC', 'HWIO', 'NHWC'))
    out = jax.nn.relu(bn(out, params["bn2"]))
    out = bn(conv1x1(out, params["conv3_w"]), params["bn3"])
    if "down_w" in params:
        res = bn(conv1x1(x, params["down_w"], stride), params["down_bn"])
    else:
        res = x
    out = jax.nn.relu(out + res)
    return jnp.transpose(out, (0, 3, 1, 2))


# ------------------------------ main ------------------------------------------

if __name__ == "__main__":
    key = jax.random.PRNGKey(0)
    kp1, kx1, kp2, kx2 = jax.random.split(key, 4)

    # Config 1: projection shortcut (stride 2, 16 -> 32 channels), dilation 1.
    in_c, ch, st, dl = 16, 8, 2, 1
    params1 = init_bottleneck_params(kp1, in_c, ch, st, dl)
    x1 = jax.random.normal(kx1, (2, in_c, 16, 16), jnp.float32)    # NCHW
    out1 = jax.block_until_ready(bottleneck_forward(params1, x1, st, dl))
    ref1 = bottleneck_reference(params1, x1, st, dl)
    assert out1.shape == (2, 4 * ch, 8, 8), out1.shape
    err1 = float(jnp.max(jnp.abs(out1.astype(jnp.float32) - ref1)))
    assert jnp.allclose(out1.astype(jnp.float32), ref1, rtol=5e-2, atol=5e-2), err1

    # Config 2: identity shortcut (stride 1, in == out channels), dilation 2.
    in_c2, ch2, st2, dl2 = 32, 8, 1, 2
    params2 = init_bottleneck_params(kp2, in_c2, ch2, st2, dl2)
    x2 = jax.random.normal(kx2, (2, in_c2, 16, 16), jnp.float32)
    out2 = jax.block_until_ready(bottleneck_forward(params2, x2, st2, dl2))
    ref2 = bottleneck_reference(params2, x2, st2, dl2)
    assert out2.shape == (2, 4 * ch2, 16, 16), out2.shape
    err2 = float(jnp.max(jnp.abs(out2.astype(jnp.float32) - ref2)))
    assert jnp.allclose(out2.astype(jnp.float32), ref2, rtol=5e-2, atol=5e-2), err2

    print("KERNEL_OK")
</pallas_src>

<mosaic_0001>
module attributes {stable_mosaic.version = 11 : i64} {
  func.func @_bottleneck_kernel(%arg0: i32, %arg1: memref<4x9x16x16xbf16, #tpu.memory_space<vmem>>, %arg2: memref<16x128xbf16, #tpu.memory_space<vmem>>, %arg3: memref<1x128xf32, #tpu.memory_space<vmem>>, %arg4: memref<1152x128xbf16, #tpu.memory_space<vmem>>, %arg5: memref<1x128xf32, #tpu.memory_space<vmem>>, %arg6: memref<128x128xbf16, #tpu.memory_space<vmem>>, %arg7: memref<1x128xf32, #tpu.memory_space<vmem>>, %arg8: memref<16x128xbf16, #tpu.memory_space<vmem>>, %arg9: memref<1x128xf32, #tpu.memory_space<vmem>>, %arg10: memref<1x64x128xbf16, #tpu.memory_space<vmem>>, %arg11: memref<4x9x16x128xbf16, #tpu.memory_space<vmem>>) attributes {dimension_semantics = [#tpu.dimension_semantics<parallel>], iteration_bounds = array<i64: 2>, scalar_prefetch = 0 : i64, scratch_operands = 1 : i64, tpu.core_type = #tpu.core_type<tc>, window_params = [{transform_indices = @transform_0, window_bounds = array<i64: 4, 9, 16, 16>}, {pipeline_mode = #tpu.pipeline_mode<synchronous>, transform_indices = @transform_1, window_bounds = array<i64: 16, 128>}, {pipeline_mode = #tpu.pipeline_mode<synchronous>, transform_indices = @transform_2, window_bounds = array<i64: 1, 128>}, {pipeline_mode = #tpu.pipeline_mode<synchronous>, transform_indices = @transform_3, window_bounds = array<i64: 1152, 128>}, {pipeline_mode = #tpu.pipeline_mode<synchronous>, transform_indices = @transform_4, window_bounds = array<i64: 1, 128>}, {pipeline_mode = #tpu.pipeline_mode<synchronous>, transform_indices = @transform_5, window_bounds = array<i64: 128, 128>}, {pipeline_mode = #tpu.pipeline_mode<synchronous>, transform_indices = @transform_6, window_bounds = array<i64: 1, 128>}, {pipeline_mode = #tpu.pipeline_mode<synchronous>, transform_indices = @transform_7, window_bounds = array<i64: 16, 128>}, {pipeline_mode = #tpu.pipeline_mode<synchronous>, transform_indices = @transform_8, window_bounds = array<i64: 1, 128>}, {transform_indices = @transform_9, window_bounds = array<i64: 1, 64, 128>}]} {
    %cst = arith.constant 0.000000e+00 : bf16
    %0 = vector.broadcast %cst : bf16 to vector<4x9x16x128xbf16>
    %c0 = arith.constant 0 : index
    %c0_0 = arith.constant 0 : index
    %c0_1 = arith.constant 0 : index
    %c0_2 = arith.constant 0 : index
    %1 = vector.load %arg11[%c0, %c0_0, %c0_1, %c0_2] : memref<4x9x16x128xbf16, #tpu.memory_space<vmem>>, vector<4x9x16x128xbf16>
    tpu.vector_store %arg11[%c0, %c0_0, %c0_1, %c0_2], %0 {strides = array<i32>} : memref<4x9x16x128xbf16, #tpu.memory_space<vmem>>, vector<4x9x16x128xbf16>,
    %c0_3 = arith.constant 0 : index
    %c1 = arith.constant 1 : index
    %c1_4 = arith.constant 1 : index
    %c0_5 = arith.constant 0 : index
    %2 = vector.load %arg1[%c0_3, %c1, %c1_4, %c0_5] : memref<4x9x16x16xbf16, #tpu.memory_space<vmem>>, vector<1x8x8x16xbf16>
    %3 = vector.shape_cast %2 : vector<1x8x8x16xbf16> to vector<8x8x16xbf16>
    %4 = vector.shape_cast %3 : vector<8x8x16xbf16> to vector<64x16xbf16>
    %c0_6 = arith.constant 0 : index
    %c0_7 = arith.constant 0 : index
    %5 = vector.load %arg2[%c0_6, %c0_7] : memref<16x128xbf16, #tpu.memory_space<vmem>>, vector<16x128xbf16>
    %cst_8 = arith.constant dense<0.000000e+00> : vector<64x128xf32>
    %6 = tpu.matmul %4, %5, %cst_8 {dimension_numbers = #tpu.dot_dimension_numbers<[1], [0], [0], [1], [0, 0, 1, 1], [], []>} : vector<64x16xbf16>, vector<16x128xbf16>, vector<64x128xf32> -> vector<64x128xf32>
    %c0_9 = arith.constant 0 : index
    %c0_10 = arith.constant 0 : index
    %7 = vector.load %arg3[%c0_9, %c0_10] : memref<1x128xf32, #tpu.memory_space<vmem>>, vector<1x128xf32>
    %8 = vector.broadcast %7 : vector<1x128xf32> to vector<64x128xf32>
    %9 = arith.addf %6, %8 : vector<64x128xf32>
    %cst_11 = arith.constant 0.000000e+00 : f32
    %10 = vector.broadcast %cst_11 : f32 to vector<64x128xf32>
    %11 = arith.maximumf %9, %10 : vector<64x128xf32>
    %12 = arith.truncf %11 : vector<64x128xf32> to vector<64x128xbf16>
    %13 = vector.shape_cast %12 : vector<64x128xbf16> to vector<8x8x128xbf16>
    %c0_12 = arith.constant 0 : index
    %c1_13 = arith.constant 1 : index
    %c1_14 = arith.constant 1 : index
    %c0_15 = arith.constant 0 : index
    %14 = vector.load %arg11[%c0_12, %c1_13, %c1_14, %c0_15] : memref<4x9x16x128xbf16, #tpu.memory_space<vmem>>, vector<1x8x8x128xbf16>
    %15 = vector.shape_cast %14 : vector<1x8x8x128xbf16> to vector<8x8x128xbf16>
    %16 = vector.shape_cast %13 : vector<8x8x128xbf16> to vector<1x8x8x128xbf16>
    tpu.vector_store %arg11[%c0_12, %c1_13, %c1_14, %c0_15], %16 {strides = array<i32>} : memref<4x9x16x128xbf16, #tpu.memory_space<vmem>>, vector<1x8x8x128xbf16>,
    %c1_16 = arith.constant 1 : index
    %c1_17 = arith.constant 1 : index
    %c0_18 = arith.constant 0 : index
    %c0_19 = arith.constant 0 : index
    %17 = vector.load %arg1[%c1_16, %c1_17, %c0_18, %c0_19] : memref<4x9x16x16xbf16, #tpu.memory_space<vmem>>, vector<1x8x8x16xbf16>
    %18 = vector.shape_cast %17 : vector<1x8x8x16xbf16> to vector<8x8x16xbf16>
    %19 = vector.shape_cast %18 : vector<8x8x16xbf16> to vector<64x16xbf16>
    %c0_20 = arith.constant 0 : index
    %c0_21 = arith.constant 0 : index
    %20 = vector.load %arg2[%c0_20, %c0_21] : memref<16x128xbf16, #tpu.memory_space<vmem>>, vector<16x128xbf16>
    %cst_22 = arith.constant dense<0.000000e+00> : vector<64x128xf32>
    %21 = tpu.matmul %19, %20, %cst_22 {dimension_numbers = #tpu.dot_dimension_numbers<[1], [0], [0], [1], [0, 0, 1, 1], [], []>} : vector<64x16xbf16>, vector<16x128xbf16>, vector<64x128xf32> -> vector<64x128xf32>
    %c0_23 = arith.constant 0 : index
    %c0_24 = arith.constant 0 : index
    %22 = vector.load %arg3[%c0_23, %c0_24] : memref<1x128xf32, #tpu.memory_space<vmem>>, vector<1x128xf32>
    %23 = vector.broadcast %22 : vector<1x128xf32> to vector<64x128xf32>
    %24 = arith.addf %21, %23 : vector<64x128xf32>
    %cst_25 = arith.constant 0.000000e+00 : f32
    %25 = vector.broadcast %cst_25 : f32 to vector<64x128xf32>
    %26 = arith.maximumf %24, %25 : vector<64x128xf32>
    %27 = arith.truncf %26 : vector<64x128xf32> to vector<64x128xbf16>
    %28 = vector.shape_cast %27 : vector<64x128xbf16> to vector<8x8x128xbf16>
    %c1_26 = arith.constant 1 : index
    %c1_27 = arith.constant 1 : index
    %c0_28 = arith.constant 0 : index
    %c0_29 = arith.constant 0 : index
    %29 = vector.load %arg11[%c1_26, %c1_27, %c0_28, %c0_29] : memref<4x9x16x128xbf16, #tpu.memory_space<vmem>>, vector<1x8x8x128xbf16>
    %30 = vector.shape_cast %29 : vector<1x8x8x128xbf16> to vector<8x8x128xbf16>
    %31 = vector.shape_cast %28 : vector<8x8x128xbf16> to vector<1x8x8x128xbf16>
    tpu.vector_store %arg11[%c1_26, %c1_27, %c0_28, %c0_29], %31 {strides = array<i32>} : memref<4x9x16x128xbf16, #tpu.memory_space<vmem>>, vector<1x8x8x128xbf16>,
    %c2 = arith.constant 2 : index
    %c0_30 = arith.constant 0 : index
    %c1_31 = arith.constant 1 : index
    %c0_32 = arith.constant 0 : index
    %32 = vector.load %arg1[%c2, %c0_30, %c1_31, %c0_32] : memref<4x9x16x16xbf16, #tpu.memory_space<vmem>>, vector<1x8x8x16xbf16>
    %33 = vector.shape_cast %32 : vector<1x8x8x16xbf16> to vector<8x8x16xbf16>
    %34 = vector.shape_cast %33 : vector<8x8x16xbf16> to vector<64x16xbf16>
    %c0_33 = arith.constant 0 : index
    %c0_34 = arith.constant 0 : index
    %35 = vector.load %arg2[%c0_33, %c0_34] : memref<16x128xbf16, #tpu.memory_space<vmem>>, vector<16x128xbf16>
    %cst_35 = arith.constant dense<0.000000e+00> : vector<64x128xf32>
    %36 = tpu.matmul %34, %35, %cst_35 {dimension_numbers = #tpu.dot_dimension_numbers<[1], [0], [0], [1], [0, 0, 1, 1], [], []>} : vector<64x16xbf16>, vector<16x128xbf16>, vector<64x128xf32> -> vector<64x128xf32>
    %c0_36 = arith.constant 0 : index
    %c0_37 = arith.constant 0 : index
    %37 = vector.load %arg3[%c0_36, %c0_37] : memref<1x128xf32, #tpu.memory_space<vmem>>, vector<1x128xf32>
    %38 = vector.broadcast %37 : vector<1x128xf32> to vector<64x128xf32>
    %39 = arith.addf %36, %38 : vector<64x128xf32>
    %cst_38 = arith.constant 0.000000e+00 : f32
    %40 = vector.broadcast %cst_38 : f32 to vector<64x128xf32>
    %41 = arith.maximumf %39, %40 : vector<64x128xf32>
    %42 = arith.truncf %41 : vector<64x128xf32> to vector<64x128xbf16>
    %43 = vector.shape_cast %42 : vector<64x128xbf16> to vector<8x8x128xbf16>
    %c2_39 = arith.constant 2 : index
    %c0_40 = arith.constant 0 : index
    %c1_41 = arith.constant 1 : index
    %c0_42 = arith.constant 0 : index
    %44 = vector.load %arg11[%c2_39, %c0_40, %c1_41, %c0_42] : memref<4x9x16x128xbf16, #tpu.memory_space<vmem>>, vector<1x8x8x128xbf16>
    %45 = vector.shape_cast %44 : vector<1x8x8x128xbf16> to vector<8x8x128xbf16>
    %46 = vector.shape_cast %43 : vector<8x8x128xbf16> to vector<1x8x8x128xbf16>
    tpu.vector_store %arg11[%c2_39, %c0_40, %c1_41, %c0_42], %46 {strides = array<i32>} : memref<4x9x16x128xbf16, #tpu.memory_space<vmem>>, vector<1x8x8x128xbf16>,
    %c3 = arith.constant 3 : index
    %c0_43 = arith.constant 0 : index
    %c0_44 = arith.constant 0 : index
    %c0_45 = arith.constant 0 : index
    %47 = vector.load %arg1[%c3, %c0_43, %c0_44, %c0_45] : memref<4x9x16x16xbf16, #tpu.memory_space<vmem>>, vector<1x8x8x16xbf16>
    %48 = vector.shape_cast %47 : vector<1x8x8x16xbf16> to vector<8x8x16xbf16>
    %49 = vector.shape_cast %48 : vector<8x8x16xbf16> to vector<64x16xbf16>
    %c0_46 = arith.constant 0 : index
    %c0_47 = arith.constant 0 : index
    %50 = vector.load %arg2[%c0_46, %c0_47] : memref<16x128xbf16, #tpu.memory_space<vmem>>, vector<16x128xbf16>
    %cst_48 = arith.constant dense<0.000000e+00> : vector<64x128xf32>
    %51 = tpu.matmul %49, %50, %cst_48 {dimension_numbers = #tpu.dot_dimension_numbers<[1], [0], [0], [1], [0, 0, 1, 1], [], []>} : vector<64x16xbf16>, vector<16x128xbf16>, vector<64x128xf32> -> vector<64x128xf32>
    %c0_49 = arith.constant 0 : index
    %c0_50 = arith.constant 0 : index
    %52 = vector.load %arg3[%c0_49, %c0_50] : memref<1x128xf32, #tpu.memory_space<vmem>>, vector<1x128xf32>
    %53 = vector.broadcast %52 : vector<1x128xf32> to vector<64x128xf32>
    %54 = arith.addf %51, %53 : vector<64x128xf32>
    %cst_51 = arith.constant 0.000000e+00 : f32
    %55 = vector.broadcast %cst_51 : f32 to vector<64x128xf32>
    %56 = arith.maximumf %54, %55 : vector<64x128xf32>
    %57 = arith.truncf %56 : vector<64x128xf32> to vector<64x128xbf16>
    %58 = vector.shape_cast %57 : vector<64x128xbf16> to vector<8x8x128xbf16>
    %c3_52 = arith.constant 3 : index
    %c0_53 = arith.constant 0 : index
    %c0_54 = arith.constant 0 : index
    %c0_55 = arith.constant 0 : index
    %59 = vector.load %arg11[%c3_52, %c0_53, %c0_54, %c0_55] : memref<4x9x16x128xbf16, #tpu.memory_space<vmem>>, vector<1x8x8x128xbf16>
    %60 = vector.shape_cast %59 : vector<1x8x8x128xbf16> to vector<8x8x128xbf16>
    %61 = vector.shape_cast %58 : vector<8x8x128xbf16> to vector<1x8x8x128xbf16>
    tpu.vector_store %arg11[%c3_52, %c0_53, %c0_54, %c0_55], %61 {strides = array<i32>} : memref<4x9x16x128xbf16, #tpu.memory_space<vmem>>, vector<1x8x8x128xbf16>,
    %c0_56 = arith.constant 0 : index
    %c0_57 = arith.constant 0 : index
    %c0_58 = arith.constant 0 : index
    %c0_59 = arith.constant 0 : index
    %62 = vector.load %arg11[%c0_56, %c0_57, %c0_58, %c0_59] : memref<4x9x16x128xbf16, #tpu.memory_space<vmem>>, vector<1x8x8x128xbf16>
    %63 = vector.shape_cast %62 : vector<1x8x8x128xbf16> to vector<8x8x128xbf16>
    %c1_60 = arith.constant 1 : index
    %c0_61 = arith.constant 0 : index
    %c0_62 = arith.constant 0 : index
    %c0_63 = arith.constant 0 : index
    %64 = vector.load %arg11[%c1_60, %c0_61, %c0_62, %c0_63] : memref<4x9x16x128xbf16, #tpu.memory_space<vmem>>, vector<1x8x8x128xbf16>
    %65 = vector.shape_cast %64 : vector<1x8x8x128xbf16> to vector<8x8x128xbf16>
    %c0_64 = arith.constant 0 : index
    %c0_65 = arith.constant 0 : index
    %c1_66 = arith.constant 1 : index
    %c0_67 = arith.constant 0 : index
    %66 = vector.load %arg11[%c0_64, %c0_65, %c1_66, %c0_67] : memref<4x9x16x128xbf16, #tpu.memory_space<vmem>>, vector<1x8x8x128xbf16>
    %67 = vector.shape_cast %66 : vector<1x8x8x128xbf16> to vector<8x8x128xbf16>
    %c2_68 = arith.constant 2 : index
    %c0_69 = arith.constant 0 : index
    %c0_70 = arith.constant 0 : index
    %c0_71 = arith.constant 0 : index
    %68 = vector.load %arg11[%c2_68, %c0_69, %c0_70, %c0_71] : memref<4x9x16x128xbf16, #tpu.memory_space<vmem>>, vector<1x8x8x128xbf16>
    %69 = vector.shape_cast %68 : vector<1x8x8x128xbf16> to vector<8x8x128xbf16>
    %c3_72 = arith.constant 3 : index
    %c0_73 = arith.constant 0 : index
    %c0_74 = arith.constant 0 : index
    %c0_75 = arith.constant 0 : index
    %70 = vector.load %arg11[%c3_72, %c0_73, %c0_74, %c0_75] : memref<4x9x16x128xbf16, #tpu.memory_space<vmem>>, vector<1x8x8x128xbf16>
    %71 = vector.shape_cast %70 : vector<1x8x8x128xbf16> to vector<8x8x128xbf16>
    %c2_76 = arith.constant 2 : index
    %c0_77 = arith.constant 0 : index
    %c1_78 = arith.constant 1 : index
    %c0_79 = arith.constant 0 : index
    %72 = vector.load %arg11[%c2_76, %c0_77, %c1_78, %c0_79] : memref<4x9x16x128xbf16, #tpu.memory_space<vmem>>, vector<1x8x8x128xbf16>
    %73 = vector.shape_cast %72 : vector<1x8x8x128xbf16> to vector<8x8x128xbf16>
    %c0_80 = arith.constant 0 : index
    %c1_81 = arith.constant 1 : index
    %c0_82 = arith.constant 0 : index
    %c0_83 = arith.constant 0 : index
    %74 = vector.load %arg11[%c0_80, %c1_81, %c0_82, %c0_83] : memref<4x9x16x128xbf16, #tpu.memory_space<vmem>>, vector<1x8x8x128xbf16>
    %75 = vector.shape_cast %74 : vector<1x8x8x128xbf16> to vector<8x8x128xbf16>
    %c1_84 = arith.constant 1 : index
    %c1_85 = arith.constant 1 : index
    %c0_86 = arith.constant 0 : index
    %c0_87 = arith.constant 0 : index
    %76 = vector.load %arg11[%c1_84, %c1_85, %c0_86, %c0_87] : memref<4x9x16x128xbf16, #tpu.memory_space<vmem>>, vector<1x8x8x128xbf16>
    %77 = vector.shape_cast %76 : vector<1x8x8x128xbf16> to vector<8x8x128xbf16>
    %c0_88 = arith.constant 0 : index
    %c1_89 = arith.constant 1 : index
    %c1_90 = arith.constant 1 : index
    %c0_91 = arith.constant 0 : index
    %78 = vector.load %arg11[%c0_88, %c1_89, %c1_90, %c0_91] : memref<4x9x16x128xbf16, #tpu.memory_space<vmem>>, vector<1x8x8x128xbf16>
    %79 = vector.shape_cast %78 : vector<1x8x8x128xbf16> to vector<8x8x128xbf16>
    %80 = tpu.concatenate %63, %65, %67, %69, %71, %73, %75, %77, %79 in 2 : vector<8x8x128xbf16>, vector<8x8x128xbf16>, vector<8x8x128xbf16>, vector<8x8x128xbf16>, vector<8x8x128xbf16>, vector<8x8x128xbf16>, vector<8x8x128xbf16>, vector<8x8x128xbf16>, vector<8x8x128xbf16> -> vector<8x8x1152xbf16>
    %81 = vector.shape_cast %80 : vector<8x8x1152xbf16> to vector<64x1152xbf16>
    %c0_92 = arith.constant 0 : index
    %c0_93 = arith.constant 0 : index
    %82 = vector.load %arg4[%c0_92, %c0_93] : memref<1152x128xbf16, #tpu.memory_space<vmem>>, vector<1152x128xbf16>
    %cst_94 = arith.constant dense<0.000000e+00> : vector<64x128xf32>
    %83 = tpu.matmul %81, %82, %cst_94 {dimension_numbers = #tpu.dot_dimension_numbers<[1], [0], [0], [1], [0, 0, 1, 1], [], []>} : vector<64x1152xbf16>, vector<1152x128xbf16>, vector<64x128xf32> -> vector<64x128xf32>
    %c0_95 = arith.constant 0 : index
    %c0_96 = arith.constant 0 : index
    %84 = vector.load %arg5[%c0_95, %c0_96] : memref<1x128xf32, #tpu.memory_space<vmem>>, vector<1x128xf32>
    %85 = vector.broadcast %84 : vector<1x128xf32> to vector<64x128xf32>
    %86 = arith.addf %83, %85 : vector<64x128xf32>
    %cst_97 = arith.constant 0.000000e+00 : f32
    %87 = vector.broadcast %cst_97 : f32 to vector<64x128xf32>
    %88 = arith.maximumf %86, %87 : vector<64x128xf32>
    %89 = arith.truncf %88 : vector<64x128xf32> to vector<64x128xbf16>
    %c0_98 = arith.constant 0 : index
    %c0_99 = arith.constant 0 : index
    %90 = vector.load %arg6[%c0_98, %c0_99] : memref<128x128xbf16, #tpu.memory_space<vmem>>, vector<128x128xbf16>
    %cst_100 = arith.constant dense<0.000000e+00> : vector<64x128xf32>
    %91 = tpu.matmul %89, %90, %cst_100 {dimension_numbers = #tpu.dot_dimension_numbers<[1], [0], [0], [1], [0, 0, 1, 1], [], []>} : vector<64x128xbf16>, vector<128x128xbf16>, vector<64x128xf32> -> vector<64x128xf32>
    %c0_101 = arith.constant 0 : index
    %c0_102 = arith.constant 0 : index
    %92 = vector.load %arg7[%c0_101, %c0_102] : memref<1x128xf32, #tpu.memory_space<vmem>>, vector<1x128xf32>
    %93 = vector.broadcast %92 : vector<1x128xf32> to vector<64x128xf32>
    %94 = arith.addf %91, %93 : vector<64x128xf32>
    %c3_103 = arith.constant 3 : index
    %c0_104 = arith.constant 0 : index
    %c0_105 = arith.constant 0 : index
    %c0_106 = arith.constant 0 : index
    %95 = vector.load %arg1[%c3_103, %c0_104, %c0_105, %c0_106] : memref<4x9x16x16xbf16, #tpu.memory_space<vmem>>, vector<1x8x8x16xbf16>
    %96 = vector.shape_cast %95 : vector<1x8x8x16xbf16> to vector<8x8x16xbf16>
    %97 = vector.shape_cast %96 : vector<8x8x16xbf16> to vector<64x16xbf16>
    %c0_107 = arith.constant 0 : index
    %c0_108 = arith.constant 0 : index
    %98 = vector.load %arg8[%c0_107, %c0_108] : memref<16x128xbf16, #tpu.memory_space<vmem>>, vector<16x128xbf16>
    %cst_109 = arith.constant dense<0.000000e+00> : vector<64x128xf32>
    %99 = tpu.matmul %97, %98, %cst_109 {dimension_numbers = #tpu.dot_dimension_numbers<[1], [0], [0], [1], [0, 0, 1, 1], [], []>} : vector<64x16xbf16>, vector<16x128xbf16>, vector<64x128xf32> -> vector<64x128xf32>
    %100 = arith.addf %94, %99 : vector<64x128xf32>
    %c0_110 = arith.constant 0 : index
    %c0_111 = arith.constant 0 : index
    %101 = vector.load %arg9[%c0_110, %c0_111] : memref<1x128xf32, #tpu.memory_space<vmem>>, vector<1x128xf32>
    %102 = vector.broadcast %101 : vector<1x128xf32> to vector<64x128xf32>
    %103 = arith.addf %100, %102 : vector<64x128xf32>
    %cst_112 = arith.constant 0.000000e+00 : f32
    %104 = vector.broadcast %cst_112 : f32 to vector<64x128xf32>
    %105 = arith.maximumf %103, %104 : vector<64x128xf32>
    %106 = arith.truncf %105 : vector<64x128xf32> to vector<64x128xbf16>
    %c0_113 = arith.constant 0 : index
    %c0_114 = arith.constant 0 : index
    %c0_115 = arith.constant 0 : index
    %107 = vector.load %arg10[%c0_113, %c0_114, %c0_115] : memref<1x64x128xbf16, #tpu.memory_space<vmem>>, vector<1x64x128xbf16>
    %108 = vector.shape_cast %107 : vector<1x64x128xbf16> to vector<64x128xbf16>
    %109 = vector.shape_cast %106 : vector<64x128xbf16> to vector<1x64x128xbf16>
    tpu.vector_store %arg10[%c0_113, %c0_114, %c0_115], %109 {strides = array<i32>} : memref<1x64x128xbf16, #tpu.memory_space<vmem>>, vector<1x64x128xbf16>,
    return
  }
  func.func @transform_0(%arg0: i32) -> (i32, i32, i32, i32) {
    %c0_i32 = arith.constant 0 : i32
    %c0_i32_0 = arith.constant 0 : i32
    %c0_i32_1 = arith.constant 0 : i32
    %c0_i32_2 = arith.constant 0 : i32
    return %arg0, %c0_i32, %c0_i32_0, %c0_i32_1 : i32, i32, i32, i32
  }
  func.func @transform_1(%arg0: i32) -> (i32, i32) {
    %c0_i32 = arith.constant 0 : i32
    %c0_i32_0 = arith.constant 0 : i32
    %c0_i32_1 = arith.constant 0 : i32
    return %c0_i32, %c0_i32_0 : i32, i32
  }
  func.func @transform_2(%arg0: i32) -> (i32, i32) {
    %c0_i32 = arith.constant 0 : i32
    %c0_i32_0 = arith.constant 0 : i32
    %c0_i32_1 = arith.constant 0 : i32
    return %c0_i32, %c0_i32_0 : i32, i32
  }
  func.func @transform_3(%arg0: i32) -> (i32, i32) {
    %c0_i32 = arith.constant 0 : i32
    %c0_i32_0 = arith.constant 0 : i32
    %c0_i32_1 = arith.constant 0 : i32
    return %c0_i32, %c0_i32_0 : i32, i32
  }
  func.func @transform_4(%arg0: i32) -> (i32, i32) {
    %c0_i32 = arith.constant 0 : i32
    %c0_i32_0 = arith.constant 0 : i32
    %c0_i32_1 = arith.constant 0 : i32
    return %c0_i32, %c0_i32_0 : i32, i32
  }
  func.func @transform_5(%arg0: i32) -> (i32, i32) {
    %c0_i32 = arith.constant 0 : i32
    %c0_i32_0 = arith.constant 0 : i32
    %c0_i32_1 = arith.constant 0 : i32
    return %c0_i32, %c0_i32_0 : i32, i32
  }
  func.func @transform_6(%arg0: i32) -> (i32, i32) {
    %c0_i32 = arith.constant 0 : i32
    %c0_i32_0 = arith.constant 0 : i32
    %c0_i32_1 = arith.constant 0 : i32
    return %c0_i32, %c0_i32_0 : i32, i32
  }
  func.func @transform_7(%arg0: i32) -> (i32, i32) {
    %c0_i32 = arith.constant 0 : i32
    %c0_i32_0 = arith.constant 0 : i32
    %c0_i32_1 = arith.constant 0 : i32
    return %c0_i32, %c0_i32_0 : i32, i32
  }
  func.func @transform_8(%arg0: i32) -> (i32, i32) {
    %c0_i32 = arith.constant 0 : i32
    %c0_i32_0 = arith.constant 0 : i32
    %c0_i32_1 = arith.constant 0 : i32
    return %c0_i32, %c0_i32_0 : i32, i32
  }
  func.func @transform_9(%arg0: i32) -> (i32, i32, i32) {
    %c0_i32 = arith.constant 0 : i32
    %c0_i32_0 = arith.constant 0 : i32
    %c0_i32_1 = arith.constant 0 : i32
    return %arg0, %c0_i32, %c0_i32_0 : i32, i32, i32
  }
}

</mosaic_0001>

<bundles_post_ra>
// kernel: tpu_custom_call.1
= control target key start
LH: loop header
LB: loop body
LE: loop exit
PB: predicated region body
PF: predicated region fallthrough
CT: control target
= control target key end

     0   :  { %s5363_s0 = inlined_call_operand.hbm [shape: bf16[8,9,16,16], index: 0, kind: input, shape index: {}]   ;;  %s5364_s1 = inlined_call_operand.hbm [shape: bf16[16,128], index: 1, kind: input, shape index: {}]   ;;  %s5365_s2 = inlined_call_operand.hbm [shape: f32[1,128], index: 2, kind: input, shape index: {}]   ;;  %s5366_s3 = inlined_call_operand.hbm [shape: bf16[1152,128], index: 3, kind: input, shape index: {}]   ;;  %s5367_s4 = inlined_call_operand.hbm [shape: f32[1,128], index: 4, kind: input, shape index: {}]   ;;  %s5368_s5 = inlined_call_operand.hbm [shape: bf16[128,128], index: 5, kind: input, shape index: {}]   ;;  %s5369_s6 = inlined_call_operand.hbm [shape: f32[1,128], index: 6, kind: input, shape index: {}]   ;;  %s5370_s7 = inlined_call_operand.hbm [shape: bf16[16,128], index: 7, kind: input, shape index: {}]   ;;  %s5371_s8 = inlined_call_operand.hbm [shape: f32[1,128], index: 8, kind: input, shape index: {}]   ;;  %s5372_s9 = inlined_call_operand.hbm [shape: bf16[2,64,128], index: 9, kind: output, shape index: {}]  }
   0x1   :  { %5379 = sst [smem:[#allocation25_spill]] %s5364_s1 }
   0x2   :  { %5380 = sst [smem:[#allocation26_spill]] %s5365_s2 }
   0x3   :  { %5381 = sst [smem:[#allocation27_spill]] %s5372_s9 }
   0x4   :  { %14 = vsyncpa [#allocation4], 0 }
   0x5   :  { %16 = vsyncpa [#allocation4 + $0x1], 0 }
   0x6   :  { %17 = vsyncpa [#allocation7], 0 }
   0x7   :  { %18 = vsyncpa [#allocation10], 0 }
   0x8   :  { %19 = vsyncpa [#allocation13], 0 }
   0x9   :  { %20 = vsyncpa [#allocation16], 0 }
   0xa   :  { %21 = vsyncpa [#allocation5], 0 }
   0xb   :  { %23 = vsyncpa [#allocation5 + $0x1], 0  ;;  %s4730_s30 = smov 0   ;;  %s4732_s10 = smov 0  }
   0xc   :  { %s4734_s11 = smov 0   ;;  %s4736_s12 = smov 0  }
   0xd LB: > { %s4665_s13 = smov [#allocation6]   ;;  %s4751_s15 = sadd.s32 4294967295, %s4663_s12   ;;  %s4663_s12 = sphi %s4736_s12, %s5414_s12   ;;  %s4659_s11 = sphi %s4734_s11, %s5413_s11   ;;  %s4655_s10 = sphi %s4732_s10, %s5412_s10   ;;  %s4651_s30 = sphi %s4730_s30, %s5411_s30  }
   0xe   : > { %s266_s14 = sshll.u32 %s4665_s13, 4  ;;  %p3390_p0 = scmp.ge.s32.totalorder %s4663_s12, 1  ;;  %s4756_s14 = int_to_ptr.vmem [resolvable:$true] %s266_s14 }
   0xf   : > { %p5374_p1 = scmp.eq.s32.totalorder %s4751_s15, 0  ;;  %p254_p2 = scmp.lt.s32.totalorder %s4663_s12, 3 }
  0x10   : > { %s4666_s17 = smov [#allocation9]   ;;  %s4667_s20 = smov [#allocation12]  }
  0x11   : > { %p4758_p3 = pnand %p3390_p0, %p254_p2  ;;  %s290_s18 = sshll.u32 %s4666_s17, 4  ;;  %s4771_s18 = int_to_ptr.vmem [resolvable:$true] %s290_s18 }
  0x12   : > { %s314_s21 = sshll.u32 %s4667_s20, 4  ;;  %s5384_s1 = sld [smem:[#allocation25_spill]]  ;;  %s4773_s21 = int_to_ptr.vmem [resolvable:$true] %s314_s21 }
  0x13   : > { %s5382_s16 = scalar_select %p4758_p3, 1, 0 }
  0x14   : > { %p4110_p5 = pneg %p4758_p3 }
  0x16   : > { %p4767_p6 = pnand %p4110_p5, %p5374_p1 }
  0x18   : > { %s4327_s24 = scalar_lea.hbm %s5384_s1, 128  ;;  %p4783_p8 = pneg %p4767_p6 }
  0x19   : > { %p4328_p7 = scmp.ne.s32.totalorder %s5384_s1, %s4327_s24  ;;  %p4334_p11 = scmp.lt.u32.totalorder %s4327_s24, %s5384_s1 }
  0x1b   : > { %p4330_p9 = pnand %p4783_p8, %p4328_p7 }
  0x1d   : > { %p4331_p10 = pneg %p4330_p9 }
  0x1f   : > { %p4336_p12 = pnand %p4334_p11, %p4331_p10 }
  0x21   : > { %4339 = shalt.err (!%p4336_p12)
}
  0x22   : > { %s4340_s13 = scalar_lea.vmem %s4756_s14, 128  ;;  %p4348_p5 = scmp.lt.s32.totalorder %s4756_s14, %s4756_s14 }
  0x23   : > { %p4341_p13 = scmp.ne.s32.totalorder %s4756_s14, %s4340_s13  ;;  %p4349_p4 = scmp.lt.s32.totalorder %s4340_s13, %s4340_s13 }
  0x25   : > { %p4343_p0 = pnand %p4341_p13, %p4783_p8  ;;  %p4350_p7 = por %p4349_p4, %p4348_p5 }
  0x27   : > { %p4344_p2 = pneg %p4343_p0 }
  0x29   : > { %p4351_p9 = pnand %p4350_p7, %p4344_p2 }
  0x2b   : > { %4354 = shalt.err (!%p4351_p9)
}
  0x2c   : > { %s5376_s17 = smov 64   ;;  %s5377_s20 = smov 4  }
  0x2d   : > { %4113 = dma.hbm_to_vmem [thread:$0]  (!%p4767_p6), %s5384_s1, 128, %s4756_s14, [#allocation7], %s5376_s17, %s5376_s17, %s5377_s20  }
  0x2e   : > { %s4355_s26 = scalar_lea.hbm %s5366_s3, 9216 }
  0x2f   : > { %p4356_p4 = scmp.ne.s32.totalorder %s5366_s3, %s4355_s26  ;;  %p4362_p12 = scmp.lt.u32.totalorder %s4355_s26, %s5366_s3 }
  0x31   : > { %p4358_p10 = pnand %p4356_p4, %p4783_p8 }
  0x33   : > { %p4359_p11 = pneg %p4358_p10 }
  0x35   : > { %p4364_p13 = pnand %p4362_p12, %p4359_p11 }
  0x37   : > { %4367 = shalt.err (!%p4364_p13)
}
  0x38   : > { %s4368_s14 = scalar_lea.vmem %s4771_s18, 9216  ;;  %p4376_p7 = scmp.lt.s32.totalorder %s4771_s18, %s4771_s18 }
  0x39   : > { %p4369_p0 = scmp.ne.s32.totalorder %s4771_s18, %s4368_s14  ;;  %p4377_p9 = scmp.lt.s32.totalorder %s4368_s14, %s4368_s14 }
  0x3b   : > { %p4371_p2 = pnand %p4369_p0, %p4783_p8  ;;  %p4378_p4 = por %p4377_p9, %p4376_p7 }
  0x3d   : > { %p4372_p5 = pneg %p4371_p2 }
  0x3f   : > { %p4379_p10 = pnand %p4378_p4, %p4372_p5 }
  0x41   : > { %4382 = shalt.err (!%p4379_p10)
}
  0x42   : > { %4119 = dma.hbm_to_vmem [thread:$0]  (!%p4767_p6), %s5366_s3, 9216, %s4771_s18, [#allocation10], %s5376_s17, %s5376_s17, %s5377_s20  }
  0x43   : > { %s4383_s25 = scalar_lea.hbm %s5368_s5, 1024 }
  0x44   : > { %p4384_p11 = scmp.ne.s32.totalorder %s5368_s5, %s4383_s25  ;;  %p4390_p0 = scmp.lt.u32.totalorder %s4383_s25, %s5368_s5 }
  0x46   : > { %p4386_p12 = pnand %p4384_p11, %p4783_p8 }
  0x48   : > { %p4387_p13 = pneg %p4386_p12 }
  0x4a   : > { %p4392_p2 = pnand %p4390_p0, %p4387_p13 }
  0x4c   : > { %4395 = shalt.err (!%p4392_p2)
}
  0x4d   : > { %s4396_s18 = scalar_lea.vmem %s4773_s21, 1024  ;;  %p4404_p4 = scmp.lt.s32.totalorder %s4773_s21, %s4773_s21 }
  0x4e   : > { %p4397_p5 = scmp.ne.s32.totalorder %s4773_s21, %s4396_s18  ;;  %p4405_p10 = scmp.lt.s32.totalorder %s4396_s18, %s4396_s18 }
  0x50   : > { %p4399_p7 = pnand %p4397_p5, %p4783_p8  ;;  %p4406_p11 = por %p4405_p10, %p4404_p4 }
  0x52   : > { %p4400_p9 = pneg %p4399_p7 }
  0x54   : > { %p4407_p12 = pnand %p4406_p11, %p4400_p9 }
  0x56   : > { %4410 = shalt.err (!%p4407_p12)
}
  0x57   : > { %4125 = dma.hbm_to_vmem [thread:$0]  (!%p4767_p6), %s5368_s5, 1024, %s4773_s21, [#allocation13], %s5376_s17, %s5376_s17, %s5377_s20  }
  0x58   : > { %s4670_s22 = smov [#allocation15]   ;;  %s4671_s24 = smov [#allocation8]  }
  0x59   : > { %s338_s23 = sshll.u32 %s4670_s22, 4  ;;  %s280_s25 = sshll.u32 %s4671_s24, 4  ;;  %s339_s23 = int_to_ptr.vmem [resolvable:$true] %s338_s23  ;;  %s281_s25 = int_to_ptr.vmem [resolvable:$true] %s280_s25 }
  0x5a   : > { %s4411_s29 = scalar_lea.hbm %s5370_s7, 128 }
  0x5b   : > { %p4412_p13 = scmp.ne.s32.totalorder %s5370_s7, %s4411_s29  ;;  %p4418_p5 = scmp.lt.u32.totalorder %s4411_s29, %s5370_s7 }
  0x5d   : > { %p4414_p0 = pnand %p4412_p13, %p4783_p8 }
  0x5f   : > { %p4415_p2 = pneg %p4414_p0 }
  0x61   : > { %p4420_p7 = pnand %p4418_p5, %p4415_p2 }
  0x63   : > { %4423 = shalt.err (!%p4420_p7)
}
  0x64   : > { %s4424_s21 = scalar_lea.vmem %s339_s23, 128  ;;  %p4432_p11 = scmp.lt.s32.totalorder %s339_s23, %s339_s23 }
  0x65   : > { %p4425_p9 = scmp.ne.s32.totalorder %s339_s23, %s4424_s21  ;;  %p4433_p12 = scmp.lt.s32.totalorder %s4424_s21, %s4424_s21 }
  0x67   : > { %p4427_p4 = pnand %p4425_p9, %p4783_p8  ;;  %p4434_p1 = por %p4433_p12, %p4432_p11 }
  0x69   : > { %p4428_p10 = pneg %p4427_p4 }
  0x6b   : > { %p4435_p3 = pnand %p4434_p1, %p4428_p10 }
  0x6d   : > { %4438 = shalt.err (!%p4435_p3)
}
  0x6e   : > { %4131 = dma.hbm_to_vmem [thread:$0]  (!%p4767_p6), %s5370_s7, 128, %s339_s23, [#allocation16], %s5376_s17, %s5376_s17, %s5377_s20  }
  0x6f   : > { %s5386_s2 = sld [smem:[#allocation26_spill]] }
  0x75   : > { %s4439_s26 = scalar_lea.hbm %s5386_s2, 16 }
  0x76   : > { %p4440_p1 = scmp.ne.s32.totalorder %s5386_s2, %s4439_s26  ;;  %p4446_p0 = scmp.lt.u32.totalorder %s4439_s26, %s5386_s2 }
  0x78   : > { %p4442_p3 = pnand %p4440_p1, %p4783_p8 }
  0x7a   : > { %p4443_p13 = pneg %p4442_p3 }
  0x7c   : > { %p4448_p2 = pnand %p4446_p0, %p4443_p13 }
  0x7e   : > { %4451 = shalt.err (!%p4448_p2)
}
  0x7f   : > { %s4452_s14 = scalar_lea.vmem %s281_s25, 16  ;;  %s4459_s23 = scalar_lea.vmem %s281_s25, 32 }
  0x80   : > { %p4453_p5 = scmp.ne.s32.totalorder %s281_s25, %s4452_s14  ;;  %p4460_p4 = scmp.lt.s32.totalorder %s281_s25, %s281_s25 }
  0x81   : > { %p4461_p10 = scmp.lt.s32.totalorder %s4459_s23, %s4452_s14 }
  0x82   : > { %p4455_p7 = pnand %p4453_p5, %p4783_p8 }
  0x83   : > { %p4462_p11 = por %p4461_p10, %p4460_p4 }
  0x84   : > { %p4456_p9 = pneg %p4455_p7 }
  0x86   : > { %p4463_p12 = pnand %p4462_p11, %p4456_p9 }
  0x88   : > { %4466 = shalt.err (!%p4463_p12)
}
  0x89   : > { %4116 = dma.hbm_to_vmem [thread:$0]  (!%p4767_p6), %s5386_s2, 16, %s281_s25, [#allocation7]  }
  0x8a   : > { %s4672_s9 = smov [#allocation11]   ;;  %s4673_s24 = smov [#allocation14]  }
  0x8b   : > { %s304_s22 = sshll.u32 %s4672_s9, 4  ;;  %s328_s26 = sshll.u32 %s4673_s24, 4  ;;  %s305_s22 = int_to_ptr.vmem [resolvable:$true] %s304_s22  ;;  %s329_s26 = int_to_ptr.vmem [resolvable:$true] %s328_s26 }
  0x8c   : > { %s4467_s13 = scalar_lea.hbm %s5367_s4, 16 }
  0x8d   : > { %p4468_p1 = scmp.ne.s32.totalorder %s5367_s4, %s4467_s13  ;;  %p4474_p0 = scmp.lt.u32.totalorder %s4467_s13, %s5367_s4 }
  0x8f   : > { %p4470_p3 = pnand %p4468_p1, %p4783_p8 }
  0x91   : > { %p4471_p13 = pneg %p4470_p3 }
  0x93   : > { %p4476_p2 = pnand %p4474_p0, %p4471_p13 }
  0x95   : > { %4479 = shalt.err (!%p4476_p2)
}
  0x96   : > { %s4480_s25 = scalar_lea.vmem %s305_s22, 16  ;;  %s4487_s1 = scalar_lea.vmem %s305_s22, 32 }
  0x97   : > { %p4481_p5 = scmp.ne.s32.totalorder %s305_s22, %s4480_s25  ;;  %p4488_p4 = scmp.lt.s32.totalorder %s305_s22, %s305_s22 }
  0x98   : > { %p4489_p10 = scmp.lt.s32.totalorder %s4487_s1, %s4480_s25 }
  0x99   : > { %p4483_p7 = pnand %p4481_p5, %p4783_p8 }
  0x9a   : > { %p4490_p11 = por %p4489_p10, %p4488_p4 }
  0x9b   : > { %p4484_p9 = pneg %p4483_p7 }
  0x9d   : > { %p4491_p12 = pnand %p4490_p11, %p4484_p9 }
  0x9f   : > { %4494 = shalt.err (!%p4491_p12)
}
  0xa0   : > { %4122 = dma.hbm_to_vmem [thread:$0]  (!%p4767_p6), %s5367_s4, 16, %s305_s22, [#allocation10]  }
  0xa1   : > { %s4495_s13 = scalar_lea.hbm %s5369_s6, 16 }
  0xa2   : > { %p4496_p1 = scmp.ne.s32.totalorder %s5369_s6, %s4495_s13  ;;  %p4502_p0 = scmp.lt.u32.totalorder %s4495_s13, %s5369_s6 }
  0xa4   : > { %p4498_p3 = pnand %p4496_p1, %p4783_p8 }
  0xa6   : > { %p4499_p13 = pneg %p4498_p3 }
  0xa8   : > { %p4504_p2 = pnand %p4502_p0, %p4499_p13 }
  0xaa   : > { %4507 = shalt.err (!%p4504_p2)
}
  0xab   : > { %s4508_s25 = scalar_lea.vmem %s329_s26, 16  ;;  %s4515_s22 = scalar_lea.vmem %s329_s26, 32 }
  0xac   : > { %p4509_p5 = scmp.ne.s32.totalorder %s329_s26, %s4508_s25  ;;  %p4516_p4 = scmp.lt.s32.totalorder %s329_s26, %s329_s26 }
  0xad   : > { %p4517_p10 = scmp.lt.s32.totalorder %s4515_s22, %s4508_s25 }
  0xae   : > { %p4511_p7 = pnand %p4509_p5, %p4783_p8 }
  0xaf   : > { %p4518_p11 = por %p4517_p10, %p4516_p4 }
  0xb0   : > { %p4512_p9 = pneg %p4511_p7 }
  0xb2   : > { %p4519_p12 = pnand %p4518_p11, %p4512_p9 }
  0xb4   : > { %4522 = shalt.err (!%p4519_p12)
}
  0xb5   : > { %4128 = dma.hbm_to_vmem [thread:$0]  (!%p4767_p6), %s5369_s6, 16, %s329_s26, [#allocation13]  }
  0xb6   : > { %s4674_s24 = smov [#allocation17]   ;;  %s4523_s18 = scalar_lea.hbm %s5371_s8, 16 }
  0xb7   : > { %s352_s28 = sshll.u32 %s4674_s24, 4  ;;  %p4524_p1 = scmp.ne.s32.totalorder %s5371_s8, %s4523_s18  ;;  %s353_s28 = int_to_ptr.vmem [resolvable:$true] %s352_s28 }
  0xb8   : > { %p4530_p0 = scmp.lt.u32.totalorder %s4523_s18, %s5371_s8 }
  0xb9   : > { %p4526_p3 = pnand %p4524_p1, %p4783_p8 }
  0xbb   : > { %p4527_p13 = pneg %p4526_p3 }
  0xbd   : > { %p4532_p2 = pnand %p4530_p0, %p4527_p13 }
  0xbf   : > { %4535 = shalt.err (!%p4532_p2)
}
  0xc0   : > { %s4536_s26 = scalar_lea.vmem %s353_s28, 16  ;;  %s4543_s22 = scalar_lea.vmem %s353_s28, 32 }
  0xc1   : > { %p4537_p5 = scmp.ne.s32.totalorder %s353_s28, %s4536_s26  ;;  %p4544_p4 = scmp.lt.s32.totalorder %s353_s28, %s353_s28 }
  0xc2   : > { %p4545_p10 = scmp.lt.s32.totalorder %s4543_s22, %s4536_s26 }
  0xc3   : > { %p4539_p7 = pnand %p4537_p5, %p4783_p8 }
  0xc4   : > { %p4546_p11 = por %p4545_p10, %p4544_p4 }
  0xc5   : > { %p4540_p9 = pneg %p4539_p7 }
  0xc7   : > { %p4547_p12 = pnand %p4546_p11, %p4540_p9 }
  0xc9   : > { %4550 = shalt.err (!%p4547_p12)
}
  0xca   : > { %4134 = dma.hbm_to_vmem [thread:$0]  (!%p4767_p6), %s5371_s8, 16, %s353_s28, [#allocation16]  }
  0xcb   : > { %s3389_s27 = sadd.s32 4294967294, %s4663_s12   ;;  %s4954_s19 = sadd.s32 1, %s4663_s12  }
  0xcc   : > { %s33_s24 = ssub.s32 %s4663_s12, %s4954_s19  ;;  %s36_s29 = sadd.s32 1, %s4659_s11 }
  0xcd   : > { %p34_p8 = scmp.eq.s32.totalorder %s33_s24, 0  ;;  %p43_p1 = scmp.ne.s32.totalorder %s4659_s11, %s4655_s10 }
  0xce   : > { %p44_p3 = scmp.eq.s32.totalorder %s4663_s12, 0  ;;  %p49_p13 = scmp.ne.s32.totalorder %s4655_s10, %s4651_s30 }
  0xcf   : > { %s4965_s13 = scalar_select %p34_p8, %s4659_s11, %s36_s29  }
  0xd0   : > { %p45_p0 = por %p44_p3, %p43_p1  ;;  %p5387_p2 = scmp.eq.s32.totalorder %s4751_s15, 0 }
  0xd1   : > { %p241_p6 = scmp.eq.s32.totalorder %s4751_s15, 1  ;;  %p247_p7 = scmp.eq.s32.totalorder %s3389_s27, 1 }
  0xd2   : > { %p4969_p5 = por %p5387_p2, %p49_p13  ;;  %p4151_p9 = scmp.lt.s32.totalorder %s4663_s12, 2 }
  0xd3   : > { %s363_s28 = sand.u32 1, %s4659_s11   ;;  %p4976_p4 = por %p241_p6, %p43_p1 }
  0xd4   : > { %p4980_p10 = por %p247_p7, %p49_p13  ;;  %s4071_s21 = smul.u32 288, %s363_s28 }
  0xd5   : > { %s5389_s14 = scalar_select %p4976_p4, 1, 0 }
  0xd6   : > { %s5390_s23 = scalar_select %p4980_p10, 1, 0 }
  0xd7   : > { %s4072_s25 = smul.u32 4608, %s4663_s12  ;;  %p4985_p11 = pnand %p4151_p9, %p45_p0 }
  0xd8   : > { %s367_s27 = scalar_lea.vmem [#allocation3], %s4071_s21  ;;  %s4996_s29 = scalar_lea.sflag [#allocation4], %s363_s28 }
  0xd9   : > { %s4992_s9 = scalar_lea.hbm %s5363_s0, %s4072_s25  ;;  %s375_s24 = sshll.u32 %s367_s27, 4  ;;  %s4994_s24 = int_to_ptr.vmem [resolvable:$true] %s375_s24 }
  0xda   : > { %s4551_s17 = scalar_lea.hbm %s4992_s9, 4608  ;;  %p4553_p8 = pneg %p4985_p11 }
  0xdb   : > { %p4552_p12 = scmp.ne.s32.totalorder %s4992_s9, %s4551_s17  ;;  %s4556_s1 = scalar_lea.hbm %s5363_s0, 9216 }
  0xdc   : > { %p4557_p13 = scmp.lt.u32.totalorder %s4992_s9, %s5363_s0  ;;  %p4558_p0 = scmp.lt.u32.totalorder %s4556_s1, %s4551_s17 }
  0xdd   : > { %p4554_p1 = pnand %p4553_p8, %p4552_p12  ;;  %p4560_p6 = scmp.lt.u32.totalorder %s4551_s17, %s4992_s9 }
  0xde   : > { %p4559_p2 = por %p4558_p0, %p4557_p13 }
  0xdf   : > { %p4555_p3 = pneg %p4554_p1 }
  0xe0   : > { %p4561_p7 = por %p4560_p6, %p4559_p2 }
  0xe2   : > { %p4562_p9 = pnand %p4561_p7, %p4555_p3 }
  0xe4   : > { %4565 = shalt.err (!%p4562_p9)
}
  0xe5   : > { %s4566_s28 = scalar_lea.vmem %s4994_s24, 4608  ;;  %s4675_s21 = smov [#allocation3]  }
  0xe6   : > { %p4567_p12 = scmp.ne.s32.totalorder %s4994_s24, %s4566_s28  ;;  %s4571_s27 = sshll.u32 %s4675_s21, 4  ;;  %s4572_s27 = int_to_ptr.vmem [resolvable:$false] %s4571_s27 }
  0xe7   : > { %s4573_s2 = scalar_lea.vmem %s4572_s27, 9216  ;;  %p4574_p4 = scmp.lt.s32.totalorder %s4994_s24, %s4572_s27 }
  0xe8   : > { %p4569_p1 = pnand %p4567_p12, %p4553_p8  ;;  %p4575_p13 = scmp.lt.s32.totalorder %s4573_s2, %s4566_s28 }
  0xea   : > { %p4570_p10 = pneg %p4569_p1  ;;  %p4576_p0 = por %p4575_p13, %p4574_p4 }
  0xec   : > { %p4577_p2 = pnand %p4576_p0, %p4570_p10 }
  0xee   : > { %4580 = shalt.err (!%p4577_p2)
}
  0xef   : > { %s5392_s17 = smov 4   ;;  %s5393_s20 = smov 64  }
  0xf0   : > { %4138 = dma.hbm_to_vmem [thread:$0]  (!%p4985_p11), %s4992_s9, 4608, %s4994_s24, %s4996_s29, %s5393_s20, %s5393_s20, %s5392_s17  }
  0xf1   : > { %p5394_p8 = scmp.ne.s32.totalorder %s5382_s16, 0 }
  0xf2   : > { %s5030_s25 = sand.u32 (!%p5394_p8), 1, %s4655_s10  }
  0xf3   : > { %387 = sbr.rel (%p5394_p8) target bundleno = 1086 (0x43e), region = 56  ;;  %s390_s1 = scalar_lea.sflag (!%p5394_p8), [#allocation4], %s5030_s25 }
  0xf4   : > { %s4073_s22 = smul.u32 (!%p5394_p8), 288, %s5030_s25 }
  0xf6   : > { %s5034_s28 = scalar_lea.vmem (!%p5394_p8), [#allocation3], %s4073_s22 }
  0xfa   : > { %4626 = dma.done.wait (%p4969_p5), %s390_s1, 4608  }
  0xfb   : > { %4628 = vsyncadd (%p4969_p5), %s390_s1, 4294962688  ;;  %p5395_p4 = scmp.eq.s32.totalorder %s4751_s15, 0 }
  0xfd   : > { %4630 = dma.done.wait (%p5395_p4), [#allocation7], 144   ;;  %p5396_p10 = pmov %p5395_p4 }
  0xfe   : > { %p5397_p11 = pmov %p5395_p4 }
  0xff   : > { %4632 = vsyncadd (%p5396_p10), [#allocation7], 4294967152 }
 0x100   : > { %4634 = dma.done.wait (%p5397_p11), [#allocation10], 9232   ;;  %p5398_p3 = pmov %p5395_p4 }
 0x102   : > { %4636 = vsyncadd (%p5398_p3), [#allocation10], 4294958064  ;;  %p5399_p6 = pmov %p5398_p3 }
 0x103   : > { %p5400_p7 = pmov %p5398_p3 }
 0x104   : > { %4638 = dma.done.wait (%p5399_p6), [#allocation13], 1040  }
 0x105   : > { %4640 = vsyncadd (%p5400_p7), [#allocation13], 4294966256  ;;  %p5401_p5 = pmov %p5398_p3 }
 0x106   : > { %p5402_p9 = pmov %p5398_p3 }
 0x107   : > { %4642 = dma.done.wait (%p5401_p5), [#allocation16], 144  }
 0x108   : > { %4644 = vsyncadd (%p5402_p9), [#allocation16], 4294967152  ;;  %v4676_v0 = vmov 0   ;;  %vm515_vm0 = vsmask.f32 3328  ;;  %v4206_v1 = vld [vmem:[#allocation6] sm:$0xff]  }
 0x109   : > { %462 = vst [vmem:[#allocation2] sm:$0xff] %v4676_v0  ;;  %463 = vst [vmem:[#allocation2 + $0x8] sm:$0xff] %v4676_v0  ;;  %vm516_vm1 = vsmask.f32 7440  ;;  %v3413_v2 = vld [vmem:[%s5034_s28 + $0x8] sm:$0xf]  ;;  %3955 = vmatprep.subr.bf16.mxu0 %v4206_v1 }
 0x10a   : > { %464 = vst [vmem:[#allocation2 + $0x10] sm:$0xff] %v4676_v0  ;;  %465 = vst [vmem:[#allocation2 + $0x18] sm:$0xff] %v4676_v0  ;;  %v3414_v3 = vld [vmem:[%s5034_s28 + $0xc] sm:$0x1]  ;;  %v3415_v4 = vld [vmem:[%s5034_s28 + $0x10] sm:$0xf]  ;;  %3956 = vmatpush3.bf16.msra.mxu0 %v4206_v1 }
 0x10b   : > { %466 = vst [vmem:[#allocation2 + $0x20] sm:$0xff] %v4676_v0  ;;  %467 = vst [vmem:[#allocation2 + $0x28] sm:$0xff] %v4676_v0  ;;  %v3416_v5 = vld [vmem:[%s5034_s28 + $0x14] sm:$0x1]  ;;  %v519_v6 = vshrl.u32 %v3413_v2, 16  ;;  %v522_v7 = vshll.u32 %v3413_v2, 16 }
 0x10c   : > { %468 = vst [vmem:[#allocation2 + $0x30] sm:$0xff] %v4676_v0  ;;  %469 = vst [vmem:[#allocation2 + $0x38] sm:$0xff] %v4676_v0  ;;  %v528_v8 = vshll.u32 %v3414_v3, 16  ;;  %v533_v9 = vshrl.u32 %v3415_v4, 16  ;;  %v536_v10 = vshll.u32 %v3415_v4, 16  ;;  %v542_v11 = vshll.u32 %v3416_v5, 16 }
 0x10d   : > { %470 = vst [vmem:[#allocation2 + $0x40] sm:$0xff] %v4676_v0  ;;  %471 = vst [vmem:[#allocation2 + $0x48] sm:$0xff] %v4676_v0  ;;  %vm657_vm2 = vcmask 130048   ;;  %v521_v12 = vrot.slane %v519_v6, 4  ;;  %v524_v13 = vrot.slane %v522_v7, 5  ;;  %v5060_v16 = vld [vmem:[#allocation6] sm:$0xff]  }
 0x10e   : > { %472 = vst [vmem:[#allocation2 + $0x50] sm:$0xff] %v4676_v0  ;;  %473 = vst [vmem:[#allocation2 + $0x58] sm:$0xff] %v4676_v0  ;;  %v530_v14 = vrot.slane %v528_v8, 5  ;;  %v535_v15 = vrot.slane %v533_v9, 4  ;;  %v538_v17 = vrot.slane %v536_v10, 5  ;;  %v544_v18 = vrot.slane %v542_v11, 5  ;;  %3965 = vmatprep.subr.bf16.mxu0 %v5060_v16  ;;  %4053 = vmatprep.subr.bf16.mxu1 %v5060_v16 }
 0x10f   : > { %474 = vst [vmem:[#allocation2 + $0x60] sm:$0xff] %v4676_v0  ;;  %475 = vst [vmem:[#allocation2 + $0x68] sm:$0xff] %v4676_v0  ;;  %v3417_v19 = vld [vmem:[%s5034_s28 + $0x18] sm:$0xf]  ;;  %v3418_v20 = vld [vmem:[%s5034_s28 + $0x1c] sm:$0x1]  ;;  %v525_v21 = vor.u32 %v524_v13, %v521_v12  ;;  %4054 = vmatpush3.bf16.msra.mxu1 %v5060_v16 }
 0x110   : > { %476 = vst [vmem:[#allocation2 + $0x70] sm:$0xff] %v4676_v0  ;;  %477 = vst [vmem:[#allocation2 + $0x78] sm:$0xff] %v4676_v0  ;;  %v3419_v22 = vld [vmem:[%s5034_s28 + $0x20] sm:$0xf]  ;;  %v3420_v23 = vld [vmem:[%s5034_s28 + $0x24] sm:$0x1]  ;;  %v539_v27 = vor.u32 %v538_v17, %v535_v15 }
 0x111   : > { %478 = vst [vmem:[#allocation2 + $0x80] sm:$0xff] %v4676_v0  ;;  %479 = vst [vmem:[#allocation2 + $0x88] sm:$0xff] %v4676_v0  ;;  %v547_v24 = vshrl.u32 %v3417_v19, 16  ;;  %v550_v25 = vshll.u32 %v3417_v19, 16  ;;  %v556_v28 = vshll.u32 %v3418_v20, 16  ;;  %v561_v29 = vshrl.u32 %v3419_v22, 16 }
 0x112   : > { %480 = vst [vmem:[#allocation2 + $0x90] sm:$0xff] %v4676_v0  ;;  %481 = vst [vmem:[#allocation2 + $0x98] sm:$0xff] %v4676_v0  ;;  %v564_v30 = vshll.u32 %v3419_v22, 16  ;;  %v3421_v31 = vld [vmem:[%s5034_s28 + $0x28] sm:$0xf]  ;;  %v5076_v32 = vld [vmem:[#allocation6] sm:$0xff]  }
 0x113   : > { %482 = vst [vmem:[#allocation2 + $0xa0] sm:$0xff] %v4676_v0  ;;  %483 = vst [vmem:[#allocation2 + $0xa8] sm:$0xff] %v4676_v0  ;;  %v526_v33 = vrot.slane %v525_v21, 4  ;;  %v549_v34 = vrot.slane %v547_v24, 4  ;;  %v552_v35 = vrot.slane %v550_v25, 5  ;;  %v570_v36 = vshll.u32 %v3420_v23, 16  ;;  %3985 = vmatprep.subr.bf16.mxu1 %v5076_v32 }
 0x114   : > { %484 = vst [vmem:[#allocation2 + $0xb0] sm:$0xff] %v4676_v0  ;;  %485 = vst [vmem:[#allocation2 + $0xb8] sm:$0xff] %v4676_v0  ;;  %v3422_v37 = vld [vmem:[%s5034_s28 + $0x2c] sm:$0x1]  ;;  %v540_v38 = vrot.slane %v539_v27, 4  ;;  %v558_v39 = vrot.slane %v556_v28, 5 }
 0x115   : > { %486 = vst [vmem:[#allocation2 + $0xc0] sm:$0xff] %v4676_v0  ;;  %487 = vst [vmem:[#allocation2 + $0xc8] sm:$0xff] %v4676_v0  ;;  %v563_v40 = vrot.slane %v561_v29, 4  ;;  %v566_v41 = vrot.slane %v564_v30, 5  ;;  %v3423_v42 = vld [vmem:[%s5034_s28 + $0x30] sm:$0xf]  ;;  %v553_v44 = vor.u32 %v552_v35, %v549_v34 }
 0x116   : > { %489 = vst [vmem:[#allocation2 + $0xd8] sm:$0xff] %v4676_v0  ;;  %490 = vst [vmem:[#allocation2 + $0xe0] sm:$0xff] %v4676_v0  ;;  %v572_v45 = vrot.slane %v570_v36, 5  ;;  %v3424_v46 = vld [vmem:[%s5034_s28 + $0x34] sm:$0x1]  ;;  %v575_v47 = vshrl.u32 %v3421_v31, 16 }
 0x117   : > { %491 = vst [vmem:[#allocation2 + $0xe8] sm:$0xff] %v4676_v0  ;;  %492 = vst [vmem:[#allocation2 + $0xf0] sm:$0xff] %v4676_v0  ;;  %v567_v49 = vor.u32 %v566_v41, %v563_v40  ;;  %v578_v50 = vshll.u32 %v3421_v31, 16  ;;  %v584_v51 = vshll.u32 %v3422_v37, 16  ;;  %v3425_v52 = vld [vmem:[%s5034_s28 + $0x38] sm:$0xf] }
 0x118   : > { %493 = vst [vmem:[#allocation2 + $0xf8] sm:$0xff] %v4676_v0  ;;  %494 = vst [vmem:[#allocation2 + $0x100] sm:$0xff] %v4676_v0  ;;  %v3426_v53 = vld [vmem:[%s5034_s28 + $0x3c] sm:$0x1]  ;;  %v554_v55 = vrot.slane %v553_v44, 4  ;;  %v577_v56 = vrot.slane %v575_v47, 4 }
 0x119   : > { %495 = vst [vmem:[#allocation2 + $0x108] sm:$0xff] %v4676_v0  ;;  %496 = vst [vmem:[#allocation2 + $0x110] sm:$0xff] %v4676_v0  ;;  %v589_v57 = vshrl.u32 %v3423_v42, 16  ;;  %v3427_v58 = vld [vmem:[%s5034_s28 + $0x40] sm:$0xf]  ;;  %v568_v59 = vrot.slane %v567_v49, 4 }
 0x11a   : > { %vm5070_vm3 = vmor %vm515_vm0, %vm516_vm1  ;;  %v580_v60 = vrot.slane %v578_v50, 5  ;;  %v586_v61 = vrot.slane %v584_v51, 5  ;;  %v592_v62 = vshll.u32 %v3423_v42, 16  ;;  %v598_v1 = vshll.u32 %v3424_v46, 16  ;;  %v3428_v6 = vld [vmem:[%s5034_s28 + $0x44] sm:$0x1] }
 0x11b   : > { %v531_v43 = vsel %vm5070_vm3, %v526_v33, %v530_v14  ;;  %v545_v48 = vsel %vm5070_vm3, %v540_v38, %v544_v18  ;;  %v559_v63 = vsel %vm5070_vm3, %v554_v55, %v558_v39  ;;  %v591_v0 = vrot.slane %v589_v57, 4  ;;  %v5095_v12 = vld [vmem:[#allocation6] sm:$0xff]   ;;  %v4211_v27 = vld [vmem:[%s5034_s28 + $0x70] ss:$8 sps:$4 sm:$0xff]   ;;  %v3474_v35 = vld [vmem:[%s5034_s28 + $0x94] sm:$0x1] }
 0x11c   : > { %v3430_v54 = vcombine.low %v531_v43, %v545_v48  ;;  %v603_v2 = vshrl.u32 %v3425_v52, 16  ;;  %v573_v3 = vsel %vm5070_vm3, %v568_v59, %v572_v45  ;;  %v581_v4 = vor.u32 %v580_v60, %v577_v56  ;;  %3971 = vmatprep.mubr.msk.bf16.mxu1 %vm657_vm2, %v4211_v27  ;;  %v4212_v33 = vld [vmem:[%s5034_s28 + $0x80] ss:$8 sps:$4 sm:$0xff]   ;;  %v3473_v34 = vld [vmem:[%s5034_s28 + $0x90] sm:$0xf]  ;;  %s3412_s16 = sshll.u32 %s5030_s25, 5 }
 0x11d   : > { %v594_v5 = vrot.slane %v592_v62, 5  ;;  %v606_v7 = vshll.u32 %v3425_v52, 16  ;;  %v3431_v8 = vcombine.low %v559_v63, %v573_v3  ;;  %v600_v9 = vrot.slane %v598_v1, 5  ;;  %v3475_v37 = vld [vmem:[%s5034_s28 + $0x98] sm:$0xf]  ;;  %3972 = vmatmul.mubr.msk.bf16.vlgmr.msra.gmra.mrb[0].mxu1 %vm657_vm2, %v4212_v33  ;;  %v4225_v26 = vld [vmem:[#allocation9 + $0x18] sm:$0xff]  }
 0x11e   : > { %3957 = vmatprep.mubr.msk.bf16.mxu0 %vm657_vm2, %v3430_v54  ;;  %v605_v10 = vrot.slane %v603_v2, 4  ;;  %v612_v11 = vshll.u32 %v3426_v53, 16  ;;  %v582_v13 = vrot.slane %v581_v4, 4  ;;  %v617_v17 = vshrl.u32 %v3427_v58, 16  ;;  %v3476_v38 = vld [vmem:[%s5034_s28 + $0x9c] sm:$0x1]  ;;  %3986 = vmatpush3.bf16.msra.mxu1 %v5076_v32 }
 0x11f   : > { %v595_v14 = vor.u32 %v594_v5, %v591_v0  ;;  %v608_v15 = vrot.slane %v606_v7, 5  ;;  %3958 = vmatmul.mubr.msk.bf16.vlgmr.msra.gmra.mrb[0].mxu0 %vm657_vm2, %v3431_v8  ;;  %v620_v19 = vshll.u32 %v3427_v58, 16  ;;  %v626_v20 = vshll.u32 %v3428_v6, 16  ;;  %v4208_v42 = vld [vmem:[%s5034_s28 + $0x50] ss:$8 sps:$4 sm:$0xff]   ;;  %s459_s18 = scalar_lea.vmem [#allocation18], %s3412_s16 }
 0x120   : > { %v614_v18 = vrot.slane %v612_v11, 5  ;;  %3966 = vmatpush3.bf16.msra.mxu0 %v5060_v16  ;;  %v587_v21 = vsel %vm5070_vm3, %v582_v13, %v586_v61  ;;  %v619_v24 = vrot.slane %v617_v17, 4  ;;  %v1047_v39 = vshrl.u32 %v3473_v34, 16  ;;  %v3477_v46 = vld [vmem:[%s5034_s28 + $0xa0] sm:$0xf]  ;;  %s3240_s26 = sshll.u32 %s459_s18, 4  ;;  %s5314_s26 = int_to_ptr.vmem [resolvable:$true] %s3240_s26 }
 0x121   : > { %v596_v22 = vrot.slane %v595_v14, 4  ;;  %v609_v23 = vor.u32 %v608_v15, %v605_v10  ;;  %v622_v25 = vrot.slane %v620_v19, 5  ;;  %3975 = vmatprep.subr.bf16.mxu0 %v5095_v12  ;;  %v628_v30 = vrot.slane %v626_v20, 5  ;;  %v3478_v50 = vld [vmem:[%s5034_s28 + $0xa4] sm:$0x1]  ;;  %s3722_s9 = sshll.u32 %s4751_s15, 9 }
 0x122   : > { %v1050_v40 = vshll.u32 %v3473_v34, 16  ;;  %v1056_v43 = vshll.u32 %v3474_v35, 16  ;;  %v1061_v44 = vshrl.u32 %v3475_v37, 16  ;;  %v1064_v45 = vshll.u32 %v3475_v37, 16  ;;  %v3479_v56 = vld [vmem:[%s5034_s28 + $0xa8] sm:$0xf] }
 0x123   : > { %v601_v28 = vsel %vm5070_vm3, %v596_v22, %v600_v9  ;;  %v610_v29 = vrot.slane %v609_v23, 4  ;;  %v623_v31 = vor.u32 %v622_v25, %v619_v24  ;;  %v1049_v47 = vrot.slane %v1047_v39, 4  ;;  %v3480_v60 = vld [vmem:[%s5034_s28 + $0xac] sm:$0x1]  ;;  %v3481_v62 = vld [vmem:[%s5034_s28 + $0xb0] sm:$0xf] }
 0x124   : > { %v3432_v16 = vcombine.low %v587_v21, %v601_v28  ;;  %v1052_v48 = vrot.slane %v1050_v40, 5  ;;  %v1070_v49 = vshll.u32 %v3476_v38, 16  ;;  %v1075_v51 = vshrl.u32 %v3477_v46, 16  ;;  %v3482_v5 = vld [vmem:[%s5034_s28 + $0xb4] sm:$0x1]  ;;  %s5407_s21 = sld [smem:[#allocation27_spill]] }
 0x125   : > { %v615_v36 = vsel %vm5070_vm3, %v610_v29, %v614_v18  ;;  %v624_v41 = vrot.slane %v623_v31, 4  ;;  %v1058_v53 = vrot.slane %v1056_v43, 5  ;;  %v1063_v54 = vrot.slane %v1061_v44, 4  ;;  %v3483_v11 = vld [vmem:[%s5034_s28 + $0xb8] sm:$0xf]  ;;  %s3227_s2 = scalar_lea.sflag [#allocation5], %s5030_s25 }
 0x126   : > { %3961 = vmatprep.mubr.msk.bf16.mxu0 %vm657_vm2, %v3432_v16  ;;  %v1066_v55 = vrot.slane %v1064_v45, 5  ;;  %v1053_v58 = vor.u32 %v1052_v48, %v1049_v47  ;;  %v1072_v59 = vrot.slane %v1070_v49, 5  ;;  %v1077_v61 = vrot.slane %v1075_v51, 4  ;;  %v4210_v13 = vld [vmem:[%s5034_s28 + $0x60] ss:$8 sps:$4 sm:$0xff]   ;;  %s4581_s15 = scalar_lea.vmem %s5314_s26, 512 }
 0x127   : > { %v629_v52 = vsel %vm5070_vm3, %v624_v41, %v628_v30  ;;  %v1078_v0 = vshll.u32 %v3477_v46, 16  ;;  %v1084_v1 = vshll.u32 %v3478_v50, 16  ;;  %v1089_v32 = vshrl.u32 %v3479_v56, 16  ;;  %v3484_v18 = vld [vmem:[%s5034_s28 + $0xbc] sm:$0x1]  ;;  %p4582_p12 = scmp.ne.s32.totalorder %s5314_s26, %s4581_s15  ;;  %p5408_p1 = scmp.ne.s32.totalorder %s5389_s14, 0 }
 0x128   : > { %v3433_v57 = vcombine.low %v615_v36, %v629_v52  ;;  %v1067_v63 = vor.u32 %v1066_v55, %v1063_v54  ;;  %v1054_v2 = vrot.slane %v1053_v58, 4  ;;  %v1092_v3 = vshll.u32 %v3479_v56, 16  ;;  %v3485_v24 = vld [vmem:[%s5034_s28 + $0xc0] sm:$0xf]  ;;  %v3486_v25 = vld [vmem:[%s5034_s28 + $0xc4] sm:$0x1] }
 0x129   : > { %v1098_v4 = vshll.u32 %v3480_v60, 16  ;;  %v1103_v6 = vshrl.u32 %v3481_v62, 16  ;;  %v1080_v8 = vrot.slane %v1078_v0, 5  ;;  %v1086_v9 = vrot.slane %v1084_v1, 5  ;;  %v3487_v16 = vld [vmem:[%s5034_s28 + $0xc8] sm:$0xf]  ;;  %p4583_p13 = pnand %p4582_p12, %p5408_p1 }
 0x12a   : > { %3962 = vmatmul.mubr.msk.bf16.gmra.mrb[4].mxu0 %vm657_vm2, %v3433_v57  ;;  %v1068_v7 = vrot.slane %v1067_v63, 4  ;;  %v1091_v10 = vrot.slane %v1089_v32, 4  ;;  %v1059_v14 = vsel %vm5070_vm3, %v1054_v2, %v1058_v53  ;;  %v1094_v15 = vrot.slane %v1092_v3, 5  ;;  %v3488_v36 = vld [vmem:[%s5034_s28 + $0xcc] sm:$0x1]  ;;  %s5319_s27 = scalar_lea.hbm %s5407_s21, %s3722_s9  ;;  %s4677_s17 = smov [#allocation18]  }
 0x12b   : > { %3967 = vmatprep.mubr.msk.bf16.mxu0 %vm657_vm2, %v4208_v42  ;;  %v1100_v17 = vrot.slane %v1098_v4, 5  ;;  %v1105_v19 = vrot.slane %v1103_v6, 4  ;;  %v1081_v21 = vor.u32 %v1080_v8, %v1077_v61  ;;  %v1106_v22 = vshll.u32 %v3481_v62, 16  ;;  %v4214_v44 = vld [vmem:[%s5034_s28 + $0xd8] ss:$8 sps:$4 sm:$0xff]   ;;  %v4218_v8 = vld [vmem:[#allocation9 + $0x40] sm:$0xff]   ;;  %p4584_p0 = pneg %p4583_p13 }
 0x12c   : > { %v1073_v20 = vsel %vm5070_vm3, %v1068_v7, %v1072_v59  ;;  %v1112_v23 = vshll.u32 %v3482_v5, 16  ;;  %v1095_v28 = vor.u32 %v1094_v15, %v1091_v10  ;;  %v1117_v29 = vshrl.u32 %v3483_v11, 16  ;;  %v4215_v53 = vld [vmem:[%s5034_s28 + $0xe8] ss:$8 sps:$4 sm:$0xff]   ;;  %3987 = vmatprep.mubr.msk.bf16.mxu1 %vm657_vm2, %v4214_v44  ;;  %v4216_v59 = vld [vmem:[%s5034_s28 + $0xf8] ss:$8 sps:$4 sm:$0xff]  }
 0x12d   : > { %v3490_v27 = vcombine.low %v1059_v14, %v1073_v20  ;;  %v1120_v30 = vshll.u32 %v3483_v11, 16  ;;  %v1082_v31 = vrot.slane %v1081_v21, 4  ;;  %v1108_v33 = vrot.slane %v1106_v22, 5  ;;  %3988 = vmatmul.mubr.msk.bf16.vlgmr.msra.gmra.mrb[4].mxu1 %vm657_vm2, %v4215_v53  ;;  %v4217_v2 = vld [vmem:[%s5034_s28 + $0x108] ss:$8 sps:$4 sm:$0xff]   ;;  %v4223_v14 = vld [vmem:[#allocation9 + $0x10] sm:$0xff]  }
 0x12e   : > { %v1114_v34 = vrot.slane %v1112_v23, 5  ;;  %v1126_v35 = vshll.u32 %v3484_v18, 16  ;;  %v1096_v37 = vrot.slane %v1095_v28, 4  ;;  %v1119_v38 = vrot.slane %v1117_v29, 4  ;;  %3991 = vmatprep.mubr.msk.bf16.mxu1 %vm657_vm2, %v4216_v59  ;;  %v4220_v10 = vld [vmem:[#allocation9 + $0x48] sm:$0xff]   ;;  %v4224_v15 = vld [vmem:[#allocation9 + $0x58] sm:$0xff]  }
 0x12f   : > { %v1122_v39 = vrot.slane %v1120_v30, 5  ;;  %v1131_v40 = vshrl.u32 %v3485_v24, 16  ;;  %v1109_v41 = vor.u32 %v1108_v33, %v1105_v19  ;;  %v1134_v43 = vshll.u32 %v3485_v24, 16  ;;  %v4221_v11 = vld [vmem:[#allocation9 + $0x8] sm:$0xff]   ;;  %v4227_v18 = vld [vmem:[#allocation9 + $0xc0] sm:$0xff]   ;;  %v4236_v28 = vld [vmem:[#allocation9 + $0x30] sm:$0xff]  }
 0x130   : > { %v1128_v42 = vrot.slane %v1126_v35, 5  ;;  %v1087_v45 = vsel %vm5070_vm3, %v1082_v31, %v1086_v9  ;;  %v1140_v48 = vshll.u32 %v3486_v25, 16  ;;  %v1101_v49 = vsel %vm5070_vm3, %v1096_v37, %v1100_v17  ;;  %v4219_v9 = vld [vmem:[#allocation9] sm:$0xff]   ;;  %3806 = vmatprep.subr.bf16.mxu1 %v4227_v18  ;;  %v4230_v21 = vld [vmem:[#allocation9 + $0x68] sm:$0xff]   ;;  %v4234_v25 = vld [vmem:[#allocation9 + $0x70] sm:$0xff]   ;;  %s4585_s20 = sshll.u32 %s4677_s17, 4  ;;  %s4586_s20 = int_to_ptr.vmem [resolvable:$false] %s4585_s20 }
 0x131   : > { %v1123_v46 = vor.u32 %v1122_v39, %v1119_v38  ;;  %v1133_v47 = vrot.slane %v1131_v40, 4  ;;  %v1110_v50 = vrot.slane %v1109_v41, 4  ;;  %v1136_v51 = vrot.slane %v1134_v43, 5  ;;  %v4226_v17 = vld [vmem:[#allocation9 + $0x60] sm:$0xff]   ;;  %v4231_v22 = vld [vmem:[#allocation9 + $0xc8] sm:$0xff]   ;;  %v4237_v29 = vld [vmem:[#allocation9 + $0x90] sm:$0xff]   ;;  %p4588_p2 = scmp.lt.s32.totalorder %s5314_s26, %s4586_s20 }
 0x132   : > { %3968 = vmatmul.mubr.msk.bf16.vlgmr.msra.gmra.mrb[8].mxu0 %vm657_vm2, %v4210_v13  ;;  %v1145_v52 = vshrl.u32 %v3487_v16, 16  ;;  %v1148_v55 = vshll.u32 %v3487_v16, 16  ;;  %v1154_v56 = vshll.u32 %v3488_v36, 16  ;;  %v3491_v60 = vcombine.low %v1087_v45, %v1101_v49  ;;  %v4222_v13 = vld [vmem:[#allocation9 + $0x50] sm:$0xff]   ;;  %v4228_v19 = vld [vmem:[#allocation9 + $0x20] sm:$0xff]   ;;  %v4232_v23 = vld [vmem:[#allocation9 + $0x28] sm:$0xff]  }
 0x133   : > { %3976 = vmatpush3.bf16.msra.mxu0 %v5095_v12  ;;  %3977 = vmatprep.mubr.msk.bf16.mxu0 %vm657_vm2, %v3490_v27  ;;  %v1124_v54 = vrot.slane %v1123_v46, 4  ;;  %v1115_v57 = vsel %vm5070_vm3, %v1110_v50, %v1114_v34  ;;  %v1137_v58 = vor.u32 %v1136_v51, %v1133_v47  ;;  %v1142_v62 = vrot.slane %v1140_v48, 5  ;;  %v4229_v20 = vld [vmem:[#allocation9 + $0x80] sm:$0xff]   ;;  %v4233_v24 = vld [vmem:[#allocation9 + $0x88] sm:$0xff]   ;;  %v4235_v27 = vld [vmem:[#allocation9 + $0xd0] sm:$0xff]   ;;  %s4587_s22 = scalar_lea.vmem %s4586_s20, 1024 }
 0x134   : > { %v1147_v12 = vrot.slane %v1145_v52, 4  ;;  %v1150_v63 = vrot.slane %v1148_v55, 5  ;;  %v1156_v32 = vrot.slane %v1154_v56, 5  ;;  %3766 = vmatprep.subr.bf16.mxu0 %v4218_v8  ;;  %3807 = vmatpush3.bf16.msra.mxu1 %v4229_v20  ;;  %v4238_v30 = vld [vmem:[#allocation9 + $0x78] sm:$0xff]   ;;  %v4245_v34 = vld [vmem:[#allocation9 + $0x140] sm:$0xff]   ;;  %v4249_v37 = vld [vmem:[#allocation9 + $0xe8] sm:$0xff]   ;;  %p4589_p8 = scmp.lt.s32.totalorder %s4587_s22, %s4581_s15 }
 0x135   : > { %v1129_v61 = vsel %vm5070_vm3, %v1124_v54, %v1128_v42  ;;  %v1138_v1 = vrot.slane %v1137_v58, 4  ;;  %3992 = vmatmul.mubr.msk.bf16.gmra.mrb[8].mxu1 %vm657_vm2, %v4217_v2  ;;  %3808 = vmatprep.subr.bf16.mxu1 %v4231_v22  ;;  %v4239_v16 = vld [vmem:[#allocation9 + $0xd8] sm:$0xff]   ;;  %v4244_v35 = vld [vmem:[#allocation9 + $0xe0] sm:$0xff]   ;;  %v4251_v38 = vld [vmem:[#allocation9 + $0xa8] sm:$0xff]   ;;  %vm832_vm4 = vcmask 1044480  }
 0x136   : > { %v3492_v0 = vcombine.low %v1115_v57, %v1129_v61  ;;  %v1151_v3 = vor.u32 %v1150_v63, %v1147_v12  ;;  %v4240_v31 = vld [vmem:[#allocation9 + $0x38] sm:$0xff]   ;;  %v4247_v36 = vld [vmem:[#allocation9 + $0xa0] sm:$0xff]   ;;  %v4254_v39 = vld [vmem:[#allocation9 + $0xf0] sm:$0xff]   ;;  %vm833_vm5 = vsmask.f32 4354  ;;  %p4590_p4 = por %p4589_p8, %p4588_p2 }
 0x137   : > { %v1143_v5 = vsel %vm5070_vm3, %v1138_v1, %v1142_v62  ;;  %v4241_v33 = vld [vmem:[#allocation9 + $0x98] sm:$0xff]   ;;  %v4257_v40 = vld [vmem:[#allocation9 + $0xb0] sm:$0xff]   ;;  %v4266_v43 = vld [vmem:[#allocation9 + $0x1c0] sm:$0xff]  }
 0x138   : > { %v1152_v4 = vrot.slane %v1151_v3, 4  ;;  %3809 = vmatpush3.bf16.msra.mxu1 %v4233_v24  ;;  %v4259_v41 = vld [vmem:[#allocation9 + $0xf8] sm:$0xff]   ;;  %vm5174_vm6 = vmand %vm832_vm4, %vm833_vm5  ;;  %p4591_p10 = pnand %p4590_p4, %p4584_p0 }
 0x139   : > { %3810 = vmatprep.subr.bf16.mxu1 %v4235_v27  ;;  %v4261_v42 = vld [vmem:[#allocation9 + $0xb8] sm:$0xff]  }
 0x13a   : > { %3978 = vmatmul.mubr.msk.bf16.vlgmr.msra.gmra.mrb[12].mxu0 %vm657_vm2, %v3491_v60  ;;  %v1157_v6 = vsel %vm5070_vm3, %v1152_v4, %v1156_v32  ;;  %v5164_v44 = vld [vmem:[#allocation8] ss:$0 sm:$0xff] }
 0x13b   : > { %3981 = vmatprep.mubr.msk.bf16.mxu0 %vm657_vm2, %v3492_v0  ;;  %v3493_v7 = vcombine.low %v1143_v5, %v1157_v6  ;;  %3767 = vmatpush3.bf16.msra.mxu0 %v4219_v9 }
 0x13c   : > { %3768 = vmatprep.subr.bf16.mxu0 %v4220_v10  ;;  %3811 = vmatpush3.bf16.msra.mxu1 %v4237_v29  ;;  %v841_v10 = vld [vmem:[#allocation2 + $0x18] sm:$0x1f] }
 0x13d   : > { %3812 = vmatprep.subr.bf16.mxu1 %v4239_v16  ;;  %v838_v16 = vld [vmem:[#allocation2 + $0x10] sm:$0x1f] }
 0x13f   : > { %3769 = vmatpush3.bf16.msra.mxu0 %v4221_v11 }
 0x140   : > { %3770 = vmatprep.subr.bf16.mxu0 %v4222_v13  ;;  %3813 = vmatpush3.bf16.msra.mxu1 %v4241_v33 }
 0x141   : > { %3814 = vmatprep.subr.bf16.mxu1 %v4244_v35 }
 0x142   : > { %3982 = vmatmul.mubr.msk.bf16.gmra.mrb[16].mxu0 %vm657_vm2, %v3493_v7 }
 0x143   : > { %3771 = vmatpush3.bf16.msra.mxu0 %v4223_v14 }
 0x144   : > { %3772 = vmatprep.subr.bf16.mxu0 %v4224_v15  ;;  %3815 = vmatpush3.bf16.msra.mxu1 %v4247_v36 }
 0x145   : > { %3816 = vmatprep.subr.bf16.mxu1 %v4249_v37 }
 0x147   : > { %3773 = vmatpush3.bf16.msra.mxu0 %v4225_v26 }
 0x148   : > { %3774 = vmatprep.subr.bf16.mxu0 %v4226_v17  ;;  %3817 = vmatpush3.bf16.msra.mxu1 %v4251_v38  ;;  %v835_v17 = vld [vmem:[#allocation2 + $0x8] sm:$0x1f] }
 0x149   : > { %3818 = vmatprep.subr.bf16.mxu1 %v4254_v39 }
 0x14b   : > { %3775 = vmatpush3.bf16.msra.mxu0 %v4228_v19 }
 0x14c   : > { %3776 = vmatprep.subr.bf16.mxu0 %v4230_v21  ;;  %3819 = vmatpush3.bf16.msra.mxu1 %v4257_v40 }
 0x14d   : > { %3820 = vmatprep.subr.bf16.mxu1 %v4259_v41 }
 0x14f   : > { %3777 = vmatpush3.bf16.msra.mxu0 %v4232_v23  ;;  %v844_v23 = vld [vmem:[#allocation2 + $0x20] sm:$0x1f] }
 0x150   : > { %3778 = vmatprep.subr.bf16.mxu0 %v4234_v25  ;;  %3821 = vmatpush3.bf16.msra.mxu1 %v4261_v42 }
 0x151   : > { %3886 = vmatprep.subr.bf16.mxu1 %v4266_v43 }
 0x153   : > { %3779 = vmatpush3.bf16.msra.mxu0 %v4236_v28 }
 0x154   : > { %3780 = vmatprep.subr.bf16.mxu0 %v4238_v30 }
 0x157   : > { %3781 = vmatpush3.bf16.msra.mxu0 %v4240_v31 }
 0x158   : > { %3846 = vmatprep.subr.bf16.mxu0 %v4245_v34 }
 0x1f0   : > { %v3973_v12 = vpop.f32.mrb[0].mxu1 }
 0x1f1   : > { %v974_v62 = vadd.f32 %v3973_v12, %v5164_v44  ;;  %v965_v63 = vpop.f32.mrb[1].mxu1 }
 0x1f2   : > { %v3959_v45 = vpop.f32.mrb[0].mxu0  ;;  %v966_v2 = vadd.f32 %v5164_v44, %v965_v63  ;;  %v3974_v3 = vpop.f32.mrb[2].mxu1 }
 0x1f3   : > { %v713_v46 = vadd.f32 %v3959_v45, %v5164_v44  ;;  %v704_v47 = vpop.f32.mrb[1].mxu0  ;;  %v986_v7 = vmax.f32 %v974_v62, 0.0  ;;  %v968_v8 = vpop.f32.mrb[3].mxu1  ;;  %v977_v21 = vadd.f32 %v3974_v3, %v5164_v44  ;;  %v5189_v45 = vld [vmem:[#allocation2] sm:$0x1f] }
 0x1f4   : > { %v705_v48 = vadd.f32 %v5164_v44, %v704_v47  ;;  %v3960_v49 = vpop.f32.mrb[2].mxu0  ;;  %v984_v15 = vmax.f32 %v966_v2, 0.0  ;;  %v847_v62 = vld [vmem:[#allocation2 + $0x28] sm:$0x1f] }
 0x1f5   : > { %v737_v50 = vmax.f32 %v713_v46, 0.0  ;;  %v716_v51 = vadd.f32 %v3960_v49, %v5164_v44  ;;  %v707_v52 = vpop.f32.mrb[3].mxu0  ;;  %v3696_v20 = vpack.c.bf16 %v986_v7, %v986_v7  ;;  %v987_v34 = vmax.f32 %v977_v21, 0.0 }
 0x1f6   : > { %v735_v53 = vmax.f32 %v705_v48, 0.0  ;;  %v708_v54 = vadd.f32 %v5164_v44, %v707_v52  ;;  %v3694_v28 = vpack.c.bf16 %v984_v15, %v984_v15  ;;  %v969_v49 = vadd.f32 %v5164_v44, %v968_v8 }
 0x1f7   : > { %v3684_v55 = vpack.c.bf16 %v737_v50, %v737_v50  ;;  %v738_v56 = vmax.f32 %v716_v51, 0.0  ;;  %1027 = vst [vmem:[#allocation2 + $0x80] sm:$0xf] %v3696_v20  ;;  %v3697_v43 = vpack.c.bf16 %v987_v34, %v987_v34 }
 0x1f8   : > { %v3682_v57 = vpack.c.bf16 %v735_v53, %v735_v53  ;;  %v736_v58 = vmax.f32 %v708_v54, 0.0  ;;  %1025 = vst [vmem:[#allocation2 + $0x70] sm:$0xf] %v3694_v28 }
 0x1f9   : > { %v782_v59 = vshrl.u32 %v3684_v55, 16  ;;  %v785_v60 = vshll.u32 %v3684_v55, 16  ;;  %v3685_v61 = vpack.c.bf16 %v738_v56, %v738_v56  ;;  %1028 = vst [vmem:[#allocation2 + $0x88] sm:$0xf] %v3697_v43  ;;  %v1629_v55 = vshll.u32 %v5189_v45, 16 }
 0x1fa   : > { %v768_v0 = vshrl.u32 %v3682_v57, 16  ;;  %v771_v1 = vshll.u32 %v3682_v57, 16  ;;  %v3683_v32 = vpack.c.bf16 %v736_v58, %v736_v58  ;;  %v853_v56 = vld [vmem:[#allocation2 + $0x38] sm:$0x1f] }
 0x1fb   : > { %v784_v4 = vrot.slane %v782_v59, 7  ;;  %v789_v5 = vshrl.u32 %v3685_v61, 16  ;;  %v792_v6 = vshll.u32 %v3685_v61, 16 }
 0x1fc   : > { %v770_v11 = vrot.slane %v768_v0, 7  ;;  %v775_v13 = vshrl.u32 %v3683_v32, 16  ;;  %v778_v14 = vshll.u32 %v3683_v32, 16 }
 0x1fd   : > { %v787_v26 = vor.u32 %v785_v60, %v784_v4  ;;  %v791_v18 = vrot.slane %v789_v5, 7  ;;  %v3963_v19 = vpop.f32.mrb[4].mxu0  ;;  %v985_v60 = vmax.f32 %v969_v49, 0.0  ;;  %v1627_v49 = vshrl.u32 %v5189_v45, 16 }
 0x1fe   : > { %v773_v22 = vor.u32 %v771_v1, %v770_v11  ;;  %v777_v24 = vrot.slane %v775_v13, 7  ;;  %v729_v25 = vadd.f32 %v3963_v19, %v5164_v44  ;;  %v720_v27 = vpop.f32.mrb[5].mxu0 }
 0x1ff   : > { %v842_v29 = vsel %vm5174_vm6, %v787_v26, %v841_v10  ;;  %v794_v30 = vor.u32 %v792_v6, %v791_v18  ;;  %v721_v31 = vadd.f32 %v5164_v44, %v720_v27  ;;  %v3964_v33 = vpop.f32.mrb[6].mxu0  ;;  %v856_v26 = vld [vmem:[#allocation2 + $0x40] sm:$0x1f]  ;;  %v3695_v34 = vpack.c.bf16 %v985_v60, %v985_v60 }
 0x200   : > { %843 = vst [vmem:[#allocation2 + $0x18] sm:$0x1f] %v842_v29  ;;  %v836_v35 = vsel %vm5174_vm6, %v773_v22, %v835_v17  ;;  %v780_v36 = vor.u32 %v778_v14, %v777_v24  ;;  %v741_v37 = vmax.f32 %v729_v25, 0.0  ;;  %v732_v38 = vadd.f32 %v3964_v33, %v5164_v44  ;;  %v723_v39 = vpop.f32.mrb[7].mxu0  ;;  %v3989_v14 = vpop.f32.mrb[4].mxu1 }
 0x201   : > { %837 = vst [vmem:[#allocation2 + $0x8] sm:$0x1f] %v836_v35  ;;  %v845_v40 = vsel %vm5174_vm6, %v794_v30, %v844_v23  ;;  %v739_v41 = vmax.f32 %v721_v31, 0.0  ;;  %v724_v42 = vadd.f32 %v5164_v44, %v723_v39  ;;  %v850_v22 = vld [vmem:[#allocation2 + $0x30] sm:$0x1f]  ;;  %v1473_v25 = vpop.f32.mrb[5].mxu1  ;;  %v1482_v35 = vadd.f32 %v3989_v14, %v5164_v44 }
 0x202   : > { %846 = vst [vmem:[#allocation2 + $0x20] sm:$0x1f] %v845_v40  ;;  %v839_v46 = vsel %vm5174_vm6, %v780_v36, %v838_v16  ;;  %v3688_v47 = vpack.c.bf16 %v741_v37, %v741_v37  ;;  %v742_v48 = vmax.f32 %v732_v38, 0.0  ;;  %v3990_v16 = vpop.f32.mrb[6].mxu1  ;;  %1026 = vst [vmem:[#allocation2 + $0x78] sm:$0xf] %v3695_v34 }
 0x203   : > { %840 = vst [vmem:[#allocation2 + $0x10] sm:$0x1f] %v839_v46  ;;  %v3686_v50 = vpack.c.bf16 %v739_v41, %v739_v41  ;;  %v740_v51 = vmax.f32 %v724_v42, 0.0  ;;  %v1476_v36 = vpop.f32.mrb[7].mxu1  ;;  %v1474_v41 = vadd.f32 %v5164_v44, %v1473_v25  ;;  %v1485_v42 = vadd.f32 %v3990_v16, %v5164_v44  ;;  %v1368_v16 = vld [vmem:[#allocation2 + $0xa8] sm:$0x1f] }
 0x204   : > { %v810_v52 = vshrl.u32 %v3688_v47, 16  ;;  %v813_v53 = vshll.u32 %v3688_v47, 16  ;;  %v3689_v54 = vpack.c.bf16 %v742_v48, %v742_v48  ;;  %v1506_v47 = vmax.f32 %v1482_v35, 0.0 }
 0x205   : > { %v796_v57 = vshrl.u32 %v3686_v50, 16  ;;  %v799_v58 = vshll.u32 %v3686_v50, 16  ;;  %v3687_v12 = vpack.c.bf16 %v740_v51, %v740_v51  ;;  %v3969_v59 = vpop.f32.mrb[8].mxu0  ;;  %v1477_v48 = vadd.f32 %v5164_v44, %v1476_v36 }
 0x206   : > { %v812_v61 = vrot.slane %v810_v52, 7  ;;  %v817_v63 = vshrl.u32 %v3689_v54, 16  ;;  %v820_v0 = vshll.u32 %v3689_v54, 16  ;;  %v958_v1 = vadd.f32 %v3969_v59, %v5164_v44  ;;  %v949_v32 = vpop.f32.mrb[9].mxu0 }
 0x207   : > { %v798_v2 = vrot.slane %v796_v57, 7  ;;  %v803_v3 = vshrl.u32 %v3687_v12, 16  ;;  %v806_v4 = vshll.u32 %v3687_v12, 16  ;;  %v950_v5 = vadd.f32 %v5164_v44, %v949_v32  ;;  %v3970_v6 = vpop.f32.mrb[10].mxu0 }
 0x208   : > { %v815_v7 = vor.u32 %v813_v53, %v812_v61  ;;  %v819_v8 = vrot.slane %v817_v63, 7  ;;  %v982_v10 = vmax.f32 %v958_v1, 0.0  ;;  %v961_v11 = vadd.f32 %v3970_v6, %v5164_v44  ;;  %v952_v13 = vpop.f32.mrb[11].mxu0  ;;  %v5206_v37 = vld [vmem:[#allocation2 + $0x8] sm:$0x1f]  ;;  %v3993_v60 = vpop.f32.mrb[8].mxu1 }
 0x209   : > { %v801_v15 = vor.u32 %v799_v58, %v798_v2  ;;  %v805_v17 = vrot.slane %v803_v3, 7  ;;  %v980_v18 = vmax.f32 %v950_v5, 0.0  ;;  %v953_v19 = vadd.f32 %v5164_v44, %v952_v13  ;;  %v5219_v1 = vpop.f32.mrb[9].mxu1  ;;  %v4248_v3 = vld [vmem:[#allocation9 + $0x100] sm:$0xff]  }
 0x20a   : > { %v854_v20 = vsel %vm5174_vm6, %v815_v7, %v853_v56  ;;  %v822_v21 = vor.u32 %v820_v0, %v819_v8  ;;  %v3692_v23 = vpack.c.bf16 %v982_v10, %v982_v10  ;;  %v983_v24 = vmax.f32 %v961_v11, 0.0  ;;  %v5225_v6 = vpop.f32.mrb[10].mxu1  ;;  %v4243_v10 = vld [vmem:[#allocation2] ss:$8 sps:$4 sm:$0xff]   ;;  %v4250_v11 = vld [vmem:[#allocation9 + $0x148] sm:$0xff]  }
 0x20b   : > { %855 = vst [vmem:[#allocation2 + $0x38] sm:$0x1f] %v854_v20  ;;  %v848_v27 = vsel %vm5174_vm6, %v801_v15, %v847_v62  ;;  %v808_v28 = vor.u32 %v806_v4, %v805_v17  ;;  %v3690_v29 = vpack.c.bf16 %v980_v18, %v980_v18  ;;  %v981_v30 = vmax.f32 %v953_v19, 0.0 }
 0x20c   : > { %849 = vst [vmem:[#allocation2 + $0x28] sm:$0x1f] %v848_v27  ;;  %v857_v31 = vsel %vm5174_vm6, %v822_v21, %v856_v26  ;;  %1023 = vst [vmem:[#allocation2 + $0x60] sm:$0xf] %v3692_v23  ;;  %v3693_v33 = vpack.c.bf16 %v983_v24, %v983_v24  ;;  %v1504_v52 = vmax.f32 %v1474_v41, 0.0  ;;  %v1507_v53 = vmax.f32 %v1485_v42, 0.0 }
 0x20d   : > { %858 = vst [vmem:[#allocation2 + $0x40] sm:$0x1f] %v857_v31  ;;  %v851_v38 = vsel %vm5174_vm6, %v808_v28, %v850_v22  ;;  %1021 = vst [vmem:[#allocation2 + $0x50] sm:$0xf] %v3690_v29  ;;  %v3691_v39 = vpack.c.bf16 %v981_v30, %v981_v30  ;;  %v3979_v40 = vpop.f32.mrb[12].mxu0  ;;  %v1636_v54 = vshll.u32 %v5206_v37, 16  ;;  %v3708_v12 = vpack.c.bf16 %v1506_v47, %v1506_v47 }
 0x20e   : > { %852 = vst [vmem:[#allocation2 + $0x30] sm:$0x1f] %v851_v38  ;;  %1024 = vst [vmem:[#allocation2 + $0x68] sm:$0xf] %v3693_v33  ;;  %v1240_v43 = vadd.f32 %v3979_v40, %v5164_v44  ;;  %v1231_v46 = vpop.f32.mrb[13].mxu0  ;;  %v1505_v59 = vmax.f32 %v1477_v48, 0.0  ;;  %v3706_v63 = vpack.c.bf16 %v1504_v52, %v1504_v52  ;;  %v3709_v0 = vpack.c.bf16 %v1507_v53, %v1507_v53 }
 0x20f   : > { %1022 = vst [vmem:[#allocation2 + $0x58] sm:$0xf] %v3691_v39  ;;  %v1232_v50 = vadd.f32 %v5164_v44, %v1231_v46  ;;  %v3980_v51 = vpop.f32.mrb[14].mxu0  ;;  %1547 = vst [vmem:[#allocation2 + $0xe8] sm:$0xf] %v3708_v12  ;;  %v5223_v5 = vrot.slane %v1629_v55, 1  ;;  %v5230_v17 = vadd.f32 %v3993_v60, %v5164_v44 }
 0x210   : > { %v1264_v56 = vmax.f32 %v1240_v43, 0.0  ;;  %v1243_v57 = vadd.f32 %v3980_v51, %v5164_v44  ;;  %v1234_v58 = vpop.f32.mrb[15].mxu0  ;;  %v3707_v4 = vpack.c.bf16 %v1505_v59, %v1505_v59  ;;  %1545 = vst [vmem:[#allocation2 + $0xd8] sm:$0xf] %v3706_v63  ;;  %1548 = vst [vmem:[#allocation2 + $0xf0] sm:$0xf] %v3709_v0 }
 0x211   : > { %v1262_v61 = vmax.f32 %v1232_v50, 0.0  ;;  %v1235_v62 = vadd.f32 %v5164_v44, %v1234_v58  ;;  %v5227_v26 = vrot.slane %v1636_v54, 1  ;;  %v1365_v55 = vld [vmem:[#allocation2 + $0xa0] sm:$0x1f]  ;;  %v1359_v24 = vld [vmem:[#allocation2 + $0x90] sm:$0x1f] }
 0x212   : > { %v3700_v32 = vpack.c.bf16 %v1264_v56, %v1264_v56  ;;  %v1265_v2 = vmax.f32 %v1243_v57, 0.0  ;;  %1546 = vst [vmem:[#allocation2 + $0xe0] sm:$0xf] %v3707_v4  ;;  %v4252_v43 = vld [vmem:[#allocation9 + $0x108] sm:$0xff]   ;;  %v5235_v46 = vpop.f32.mrb[11].mxu1  ;;  %v4255_v52 = vld [vmem:[#allocation9 + $0x150] sm:$0xff]  }
 0x213   : > { %v3698_v7 = vpack.c.bf16 %v1262_v61, %v1262_v61  ;;  %v1263_v8 = vmax.f32 %v1235_v62, 0.0  ;;  %v1362_v56 = vld [vmem:[#allocation2 + $0x98] sm:$0x1f]  ;;  %v4260_v0 = vld [vmem:[#allocation9 + $0x158] sm:$0xff]  }
 0x214   : > { %v1309_v13 = vshrl.u32 %v3700_v32, 16  ;;  %v3701_v14 = vpack.c.bf16 %v1265_v2, %v1265_v2  ;;  %v4242_v15 = vld [vmem:[#allocation2 + $0x48] ss:$8 sps:$4 sm:$0xff]   ;;  %v1312_v18 = vshll.u32 %v3700_v32, 16  ;;  %v4258_v12 = vld [vmem:[#allocation9 + $0x110] sm:$0xff]  }
 0x215   : > { %v1295_v19 = vshrl.u32 %v3698_v7, 16  ;;  %v1298_v20 = vshll.u32 %v3698_v7, 16  ;;  %v3699_v21 = vpack.c.bf16 %v1263_v8, %v1263_v8  ;;  %v3983_v22 = vpop.f32.mrb[16].mxu0  ;;  %2601 = vmatprep.mubr.bf16.mxu0 %v4242_v15  ;;  %v4253_v63 = vld [vmem:[#allocation2 + $0x10] ss:$8 sps:$4 sm:$0xff]  }
 0x216   : > { %v1311_v23 = vrot.slane %v1309_v13, 7  ;;  %v1316_v25 = vshrl.u32 %v3701_v14, 16  ;;  %v1319_v27 = vshll.u32 %v3701_v14, 16  ;;  %v1256_v28 = vadd.f32 %v3983_v22, %v5164_v44  ;;  %v1247_v29 = vpop.f32.mrb[17].mxu0  ;;  %2602 = vmatmul.mubr.bf16.vlgmr.msra.gmra.mrb[20].mxu0 %v4243_v10  ;;  %v4246_v36 = vld [vmem:[#allocation2 + $0x58] ss:$8 sps:$4 sm:$0xff]  }
 0x217   : > { %v1297_v30 = vrot.slane %v1295_v19, 7  ;;  %v1302_v31 = vshrl.u32 %v3699_v21, 16  ;;  %v1305_v33 = vshll.u32 %v3699_v21, 16  ;;  %v1248_v34 = vadd.f32 %v5164_v44, %v1247_v29  ;;  %v3984_v35 = vpop.f32.mrb[18].mxu0  ;;  %3847 = vmatpush3.bf16.msra.mxu0 %v4248_v3  ;;  %2609 = vmatprep.mubr.bf16.mxu0 %v4246_v36  ;;  %v5244_v7 = vld [vmem:[#allocation2 + $0x10] sm:$0x1f] }
 0x218   : > { %v1314_v38 = vor.u32 %v1312_v18, %v1311_v23  ;;  %v1318_v39 = vrot.slane %v1316_v25, 7  ;;  %v1268_v40 = vmax.f32 %v1256_v28, 0.0  ;;  %v1259_v41 = vadd.f32 %v3984_v35, %v5164_v44  ;;  %v1250_v42 = vpop.f32.mrb[19].mxu0  ;;  %3848 = vmatprep.subr.bf16.mxu0 %v4250_v11  ;;  %v1377_v10 = vld [vmem:[#allocation2 + $0xc0] sm:$0x1f] }
 0x219   : > { %v1300_v47 = vor.u32 %v1298_v20, %v1297_v30  ;;  %v1304_v48 = vrot.slane %v1302_v31, 7  ;;  %v1266_v50 = vmax.f32 %v1248_v34, 0.0  ;;  %v1251_v51 = vadd.f32 %v5164_v44, %v1250_v42  ;;  %v4256_v15 = vld [vmem:[#allocation2 + $0x68] ss:$8 sps:$4 sm:$0xff]  }
 0x21a   : > { %v1366_v53 = vsel %vm5174_vm6, %v1314_v38, %v1365_v55  ;;  %v1321_v54 = vor.u32 %v1319_v27, %v1318_v39  ;;  %v3704_v57 = vpack.c.bf16 %v1268_v40, %v1268_v40  ;;  %v1269_v58 = vmax.f32 %v1259_v41, 0.0  ;;  %v1371_v27 = vld [vmem:[#allocation2 + $0xb0] sm:$0x1f]  ;;  %v1380_v29 = vld [vmem:[#allocation2 + $0xc8] sm:$0x1f] }
 0x21b   : > { %1367 = vst [vmem:[#allocation2 + $0xa0] sm:$0x1f] %v1366_v53  ;;  %v1360_v59 = vsel %vm5174_vm6, %v1300_v47, %v1359_v24  ;;  %v1307_v60 = vor.u32 %v1305_v33, %v1304_v48  ;;  %v3702_v61 = vpack.c.bf16 %v1266_v50, %v1266_v50  ;;  %v1267_v62 = vmax.f32 %v1251_v51, 0.0  ;;  %3849 = vmatpush3.bf16.msra.mxu0 %v4252_v43  ;;  %v5249_v24 = vld [vmem:[#allocation2 + $0x18] sm:$0x1f]  ;;  %v4262_v30 = vld [vmem:[#allocation9 + $0x118] sm:$0xff]  }
 0x21c   : > { %1361 = vst [vmem:[#allocation2 + $0x90] sm:$0x1f] %v1360_v59  ;;  %v1369_v32 = vsel %vm5174_vm6, %v1321_v54, %v1368_v16  ;;  %v1337_v2 = vshrl.u32 %v3704_v57, 16  ;;  %v1340_v3 = vshll.u32 %v3704_v57, 16  ;;  %v3705_v4 = vpack.c.bf16 %v1269_v58, %v1269_v58  ;;  %3850 = vmatprep.subr.bf16.mxu0 %v4255_v52  ;;  %v4265_v34 = vld [vmem:[#allocation9 + $0x160] sm:$0xff]   ;;  %v4272_v57 = vld [vmem:[#allocation9 + $0x1c8] sm:$0xff]  }
 0x21d   : > { %1370 = vst [vmem:[#allocation2 + $0xa8] sm:$0x1f] %v1369_v32  ;;  %v1363_v8 = vsel %vm5174_vm6, %v1307_v60, %v1362_v56  ;;  %v1323_v11 = vshrl.u32 %v3702_v61, 16  ;;  %v1326_v13 = vshll.u32 %v3702_v61, 16  ;;  %v3703_v14 = vpack.c.bf16 %v1267_v62, %v1267_v62  ;;  %v1374_v40 = vld [vmem:[#allocation2 + $0xb8] sm:$0x1f] }
 0x21e   : > { %1364 = vst [vmem:[#allocation2 + $0x98] sm:$0x1f] %v1363_v8  ;;  %v1339_v18 = vrot.slane %v1337_v2, 7  ;;  %v1344_v55 = vshrl.u32 %v3705_v4, 16  ;;  %v1347_v19 = vshll.u32 %v3705_v4, 16  ;;  %v1634_v20 = vshrl.u32 %v5206_v37, 16  ;;  %2610 = vmatmul.mubr.bf16.gmra.mrb[24].mxu0 %v4253_v63 }
 0x21f   : > { %v1325_v21 = vrot.slane %v1323_v11, 7  ;;  %v1330_v22 = vshrl.u32 %v3703_v14, 16  ;;  %v1333_v23 = vshll.u32 %v3703_v14, 16  ;;  %2617 = vmatprep.mubr.bf16.mxu0 %v4256_v15  ;;  %3851 = vmatpush3.bf16.msra.mxu0 %v4258_v12  ;;  %v1632_v16 = vor.u32 %v5223_v5, %v1627_v49  ;;  %v4267_v41 = vld [vmem:[#allocation9 + $0x120] sm:$0xff]   ;;  %v4269_v51 = vld [vmem:[#allocation2 + $0x78] ss:$8 sps:$4 sm:$0xff]  }
 0x220   : > { %v1342_v25 = vor.u32 %v1340_v3, %v1339_v18  ;;  %v1346_v28 = vrot.slane %v1344_v55, 7  ;;  %v1639_v31 = vor.u32 %v5227_v26, %v1634_v20  ;;  %3852 = vmatprep.subr.bf16.mxu0 %v4260_v0  ;;  %v1643_v35 = vshll.u32 %v5244_v7, 16  ;;  %v4263_v42 = vld [vmem:[#allocation2 + $0x20] ss:$8 sps:$4 sm:$0xff]   ;;  %v4273_v59 = vld [vmem:[#allocation9 + $0x128] sm:$0xff]  }
 0x221   : > { %v1328_v37 = vor.u32 %v1326_v13, %v1325_v21  ;;  %v1332_v33 = vrot.slane %v1330_v22, 7  ;;  %v1510_v36 = vmax.f32 %v5230_v17, 0.0  ;;  %v1650_v45 = vshll.u32 %v5249_v24, 16  ;;  %v4268_v43 = vld [vmem:[#allocation9 + $0x180] sm:$0xff]   ;;  %v5276_v63 = vld [vmem:[#allocation2 + $0x20] sm:$0x1f] }
 0x222   : > { %v1378_v38 = vsel %vm5174_vm6, %v1342_v25, %v1377_v10  ;;  %v1349_v39 = vor.u32 %v1347_v19, %v1346_v28  ;;  %v1490_v49 = vadd.f32 %v5164_v44, %v5219_v1  ;;  %v1501_v48 = vadd.f32 %v5225_v6, %v5164_v44  ;;  %v4271_v1 = vld [vmem:[#allocation9 + $0x168] sm:$0xff]   ;;  %v5278_v0 = vld [vmem:[#allocation2 + $0x28] sm:$0x1f]  ;;  %v4276_v10 = vld [vmem:[#allocation9 + $0x170] sm:$0xff]  }
 0x223   : > { %1379 = vst [vmem:[#allocation2 + $0xc0] sm:$0x1f] %v1378_v38  ;;  %v1372_v5 = vsel %vm5174_vm6, %v1328_v37, %v1371_v27  ;;  %v1335_v26 = vor.u32 %v1333_v23, %v1332_v33  ;;  %v5264_v47 = vld [vmem:[#allocation2 + $0x90] sm:$0x1f]  ;;  %v3712_v17 = vpack.c.bf16 %v1510_v36, %v1510_v36  ;;  %3853 = vmatpush3.bf16.msra.mxu0 %v4262_v30  ;;  %v1641_v52 = vshrl.u32 %v5244_v7, 16  ;;  %v4277_v55 = vld [vmem:[#allocation9 + $0x1d0] sm:$0xff]  }
 0x224   : > { %1373 = vst [vmem:[#allocation2 + $0xb0] sm:$0x1f] %v1372_v5  ;;  %v1381_v50 = vsel %vm5174_vm6, %v1349_v39, %v1380_v29  ;;  %v1685_v53 = vshll.u32 %v5264_v47, 16  ;;  %3854 = vmatprep.subr.bf16.mxu0 %v4265_v34  ;;  %v1493_v6 = vadd.f32 %v5164_v44, %v5235_v46  ;;  %v3536_v12 = vcombine.low %v1632_v16, %v1639_v31  ;;  %v4270_v9 = vld [vmem:[#allocation2 + $0xa0] ss:$8 sps:$4 sm:$0xff]   ;;  %v4274_v32 = vld [vmem:[#allocation9 + $0x188] sm:$0xff]  }
 0x225   : > { %1382 = vst [vmem:[#allocation2 + $0xc8] sm:$0x1f] %v1381_v50  ;;  %v1375_v54 = vsel %vm5174_vm6, %v1335_v26, %v1374_v40  ;;  %v4264_v56 = vld [vmem:[#allocation2 + $0x90] ss:$8 sps:$4 sm:$0xff]   ;;  %1551 = vst [vmem:[#allocation2 + $0x108] sm:$0xf] %v3712_v17 }
 0x226   : > { %v1595_v58 = vld [vmem:[#allocation2 + $0x98] sm:$0x1f]  ;;  %1376 = vst [vmem:[#allocation2 + $0xb8] sm:$0x1f] %v1375_v54  ;;  %v1645_v60 = vrot.slane %v1643_v35, 1  ;;  %v1652_v61 = vrot.slane %v1650_v45, 1  ;;  %2618 = vmatmul.mubr.bf16.gmra.mrb[28].mxu0 %v4263_v42  ;;  %2666 = vmatprep.mubr.bf16.mxu1 %v4264_v56 }
 0x227   : > { %v1692_v62 = vshll.u32 %v1595_v58, 16  ;;  %v1687_v2 = vrot.slane %v1685_v53, 1  ;;  %v1508_v3 = vmax.f32 %v1490_v49, 0.0  ;;  %v1511_v4 = vmax.f32 %v1501_v48, 0.0  ;;  %2667 = vmatmul.mubr.bf16.vlgmr.msra.gmra.mrb[12].mxu1 %v3536_v12  ;;  %3855 = vmatpush3.bf16.msra.mxu0 %v4267_v41  ;;  %v5280_v8 = vld [vmem:[#allocation2 + $0xa8] sm:$0x1f] }
 0x228   : > { %v1509_v7 = vmax.f32 %v1493_v6, 0.0  ;;  %v1690_v44 = vshrl.u32 %v1595_v58, 16  ;;  %3887 = vmatpush3.bf16.msra.mxu1 %v4268_v43  ;;  %2625 = vmatprep.mubr.bf16.mxu0 %v4269_v51  ;;  %v1664_v15 = vshll.u32 %v5278_v0, 16  ;;  %v1596_v18 = vld [vmem:[#allocation2 + $0xa0] sm:$0x1f]  ;;  %v1646_v19 = vor.u32 %v1645_v60, %v1641_v52  ;;  %v4286_v42 = vld [vmem:[#allocation9 + $0x1e0] sm:$0xff]  }
 0x229   : > { %v1694_v46 = vrot.slane %v1692_v62, 1  ;;  %v3710_v11 = vpack.c.bf16 %v1508_v3, %v1508_v3  ;;  %v3713_v13 = vpack.c.bf16 %v1511_v4, %v1511_v4  ;;  %2674 = vmatprep.mubr.bf16.mxu1 %v4270_v9  ;;  %3856 = vmatprep.subr.bf16.mxu0 %v4271_v1  ;;  %v1648_v20 = vshrl.u32 %v5249_v24, 16  ;;  %v4278_v21 = vld [vmem:[#allocation9 + $0x130] sm:$0xff]   ;;  %v4281_v30 = vld [vmem:[#allocation9 + $0x178] sm:$0xff]   ;;  %v1576_v39 = vld [vmem:[#allocation2 + $0x30] sm:$0x1f] }
 0x22a   : > { %v3711_v14 = vpack.c.bf16 %v1509_v7, %v1509_v7  ;;  %3888 = vmatprep.subr.bf16.mxu1 %v4272_v57  ;;  %v1683_v22 = vshrl.u32 %v5264_v47, 16  ;;  %v1657_v25 = vshll.u32 %v5276_v63, 16  ;;  %v1706_v27 = vshll.u32 %v5280_v8, 16  ;;  %v4279_v29 = vld [vmem:[#allocation9 + $0x190] sm:$0xff]   ;;  %v4282_v37 = vld [vmem:[#allocation9 + $0x1d8] sm:$0xff]   ;;  %v4287_v17 = vld [vmem:[#allocation9 + $0x200] sm:$0xff]  }
 0x22b   : > { %v1695_v23 = vor.u32 %v1694_v46, %v1690_v44  ;;  %1549 = vst [vmem:[#allocation2 + $0xf8] sm:$0xf] %v3710_v11  ;;  %1552 = vst [vmem:[#allocation2 + $0x110] sm:$0xf] %v3713_v13  ;;  %3857 = vmatpush3.bf16.msra.mxu0 %v4273_v59  ;;  %v1653_v28 = vor.u32 %v1652_v61, %v1648_v20  ;;  %v1699_v16 = vshll.u32 %v1596_v18, 16  ;;  %v1666_v33 = vrot.slane %v1664_v15, 1 }
 0x22c   : > { %1550 = vst [vmem:[#allocation2 + $0x100] sm:$0xf] %v3711_v14  ;;  %3889 = vmatpush3.bf16.msra.mxu1 %v4274_v32  ;;  %v4275_v31 = vld [vmem:[#allocation2 + $0x30] ss:$8 sps:$4 sm:$0xff]   ;;  %3858 = vmatprep.subr.bf16.mxu0 %v4276_v10  ;;  %v1688_v24 = vor.u32 %v1687_v2, %v1683_v22  ;;  %v4283_v36 = vld [vmem:[#allocation9 + $0x138] sm:$0xff]   ;;  %v1708_v38 = vrot.slane %v1706_v27, 1 }
 0x22d   : > { %3890 = vmatprep.subr.bf16.mxu1 %v4277_v55  ;;  %v3545_v34 = vcombine.low %v1646_v19, %v1653_v28  ;;  %v4280_v35 = vld [vmem:[#allocation2 + $0xb0] ss:$8 sps:$4 sm:$0xff]   ;;  %v1659_v41 = vrot.slane %v1657_v25, 1  ;;  %v1662_v45 = vshrl.u32 %v5278_v0, 16  ;;  %v4284_v26 = vld [vmem:[#allocation9 + $0x198] sm:$0xff]   ;;  %v1701_v43 = vrot.slane %v1699_v16, 1 }
 0x22e   : > { %2626 = vmatmul.mubr.bf16.gmra.mrb[32].mxu0 %v4275_v31  ;;  %v3539_v40 = vcombine.low %v1688_v24, %v1695_v23  ;;  %v1598_v49 = vld [vmem:[#allocation2 + $0xb0] sm:$0x1f]  ;;  %v1599_v5 = vld [vmem:[#allocation2 + $0xb8] sm:$0x1f]  ;;  %v1704_v47 = vshrl.u32 %v5280_v8, 16  ;;  %v1655_v48 = vshrl.u32 %v5276_v63, 16 }
 0x22f   : > { %2675 = vmatmul.mubr.bf16.gmra.mrb[16].mxu1 %v3545_v34  ;;  %3859 = vmatpush3.bf16.msra.mxu0 %v4278_v21  ;;  %v1667_v50 = vor.u32 %v1666_v33, %v1662_v45  ;;  %v1697_v51 = vshrl.u32 %v1596_v18, 16  ;;  %v1577_v1 = vld [vmem:[#allocation2 + $0x38] sm:$0x1f]  ;;  %v1671_v52 = vshll.u32 %v1576_v39, 16  ;;  %v1713_v54 = vshll.u32 %v1598_v49, 16  ;;  %v4288_v60 = vld [vmem:[#allocation9 + $0x1a0] sm:$0xff]  }
 0x230   : > { %2731 = vmatprep.mubr.bf16.mxu0 %v3539_v40  ;;  %3891 = vmatpush3.bf16.msra.mxu1 %v4279_v29  ;;  %v1709_v53 = vor.u32 %v1708_v38, %v1704_v47  ;;  %v1720_v56 = vshll.u32 %v1599_v5, 16  ;;  %v4285_v57 = vld [vmem:[#allocation2 + $0xd8] ss:$8 sps:$4 sm:$0xff]   ;;  %v1660_v58 = vor.u32 %v1659_v41, %v1655_v48  ;;  %v1678_v12 = vshll.u32 %v1577_v1, 16  ;;  %v1601_v44 = vld [vmem:[#allocation2 + $0xc8] sm:$0x1f] }
 0x231   : > { %2682 = vmatprep.mubr.bf16.mxu1 %v4280_v35  ;;  %3860 = vmatprep.subr.bf16.mxu0 %v4281_v30  ;;  %v1702_v6 = vor.u32 %v1701_v43, %v1697_v51  ;;  %v1673_v61 = vrot.slane %v1671_v52, 1  ;;  %v1711_v62 = vshrl.u32 %v1598_v49, 16  ;;  %v4290_v0 = vld [vmem:[#allocation9 + $0x1e8] sm:$0xff]   ;;  %v1715_v9 = vrot.slane %v1713_v54, 1  ;;  %v1600_v7 = vld [vmem:[#allocation2 + $0xc0] sm:$0x1f] }
 0x232   : > { %3892 = vmatprep.subr.bf16.mxu1 %v4282_v37  ;;  %v3554_v59 = vcombine.low %v1660_v58, %v1667_v50  ;;  %v1718_v32 = vshrl.u32 %v1599_v5, 16  ;;  %v1722_v2 = vrot.slane %v1720_v56, 1  ;;  %v4291_v3 = vld [vmem:[#allocation9 + $0x208] sm:$0xff]   ;;  %v1669_v4 = vshrl.u32 %v1576_v39, 16  ;;  %v4289_v46 = vld [vmem:[#allocation2 + $0xc0] ss:$8 sps:$4 sm:$0xff]  }
 0x233   : > { %3861 = vmatpush3.bf16.msra.mxu0 %v4283_v36  ;;  %v3548_v63 = vcombine.low %v1702_v6, %v1709_v53  ;;  %v1680_v8 = vrot.slane %v1678_v12, 1  ;;  %v4292_v10 = vld [vmem:[#allocation9 + $0x1a8] sm:$0xff]   ;;  %v1676_v13 = vshrl.u32 %v1577_v1, 16  ;;  %v4294_v14 = vld [vmem:[#allocation9 + $0x1f0] sm:$0xff]   ;;  %v1716_v18 = vor.u32 %v1715_v9, %v1711_v62  ;;  %v4298_v30 = vld [vmem:[#allocation9 + $0x1f8] sm:$0xff]  }
 0x234   : > { %3893 = vmatpush3.bf16.msra.mxu1 %v4284_v26  ;;  %3995 = vmatprep.subr.bf16.mxu0 %v4287_v17  ;;  %v1674_v11 = vor.u32 %v1673_v61, %v1669_v4  ;;  %v4295_v15 = vld [vmem:[#allocation9 + $0x210] sm:$0xff]   ;;  %v1723_v55 = vor.u32 %v1722_v2, %v1718_v32  ;;  %v1727_v19 = vshll.u32 %v1600_v7, 16  ;;  %v1734_v20 = vshll.u32 %v1601_v44, 16  ;;  %v4293_v22 = vld [vmem:[#allocation2 + $0xe8] ss:$8 sps:$4 sm:$0xff]  }
 0x235   : > { %3894 = vmatprep.subr.bf16.mxu1 %v4286_v42  ;;  %v1681_v21 = vor.u32 %v1680_v8, %v1676_v13  ;;  %v4296_v23 = vld [vmem:[#allocation9 + $0x1b0] sm:$0xff]   ;;  %v1725_v25 = vshrl.u32 %v1600_v7, 16  ;;  %v1732_v27 = vshrl.u32 %v1601_v44, 16  ;;  %v4299_v24 = vld [vmem:[#allocation9 + $0x218] sm:$0xff]   ;;  %v1619_v37 = vld [vmem:[#allocation2 + $0x10] sm:$0x1f] }
 0x236   : > { %2732 = vmatmul.mubr.bf16.vlgmr.msra.gmra.mrb[36].mxu0 %v4285_v57  ;;  %v3557_v29 = vcombine.low %v1716_v18, %v1723_v55  ;;  %v1729_v16 = vrot.slane %v1727_v19, 1  ;;  %v1736_v31 = vrot.slane %v1734_v20, 1  ;;  %v4297_v33 = vld [vmem:[#allocation2 + $0x50] ss:$8 sps:$4 sm:$0xff]   ;;  %v4300_v34 = vld [vmem:[#allocation9 + $0x1b8] sm:$0xff]   ;;  %v1748_v40 = vshll.u32 %v1619_v37, 16 }
 0x237   : > { %2683 = vmatmul.mubr.bf16.gmra.mrb[20].mxu1 %v3554_v59  ;;  %2739 = vmatprep.mubr.bf16.mxu0 %v3548_v63  ;;  %v3563_v28 = vcombine.low %v1674_v11, %v1681_v21  ;;  %v1618_v35 = vld [vmem:[#allocation2 + $0x8] sm:$0x1f]  ;;  %v4301_v41 = vld [vmem:[#allocation2 + $0xf8] ss:$8 sps:$4 sm:$0xff]   ;;  %v1746_v48 = vshrl.u32 %v1619_v37, 16 }
 0x238   : > { %3895 = vmatpush3.bf16.msra.mxu1 %v4288_v60  ;;  %3996 = vmatpush3.bf16.msra.mxu0 %v4287_v17  ;;  %v4302_v36 = vld [vmem:[#allocation9 + $0x220] sm:$0xff]   ;;  %v1730_v38 = vor.u32 %v1729_v16, %v1725_v25  ;;  %v1737_v39 = vor.u32 %v1736_v31, %v1732_v27  ;;  %v1741_v45 = vshll.u32 %v1618_v35, 16  ;;  %v4305_v26 = vld [vmem:[#allocation9 + $0x228] sm:$0xff]   ;;  %v1750_v42 = vrot.slane %v1748_v40, 1  ;;  %v1621_v47 = vld [vmem:[#allocation2 + $0x20] sm:$0x1f] }
 0x239   : > { %2690 = vmatprep.mubr.bf16.mxu1 %v4289_v46  ;;  %3896 = vmatprep.subr.bf16.mxu1 %v4290_v0  ;;  %v4303_v5 = vld [vmem:[#allocation2 + $0x8] ss:$8 sps:$4 sm:$0xff]   ;;  %v1620_v51 = vld [vmem:[#allocation2 + $0x18] sm:$0x1f]  ;;  %v1739_v52 = vshrl.u32 %v1618_v35, 16  ;;  %v1762_v54 = vshll.u32 %v1621_v47, 16 }
 0x23a   : > { %3997 = vmatprep.subr.bf16.mxu0 %v4291_v3  ;;  %v3566_v49 = vcombine.low %v1730_v38, %v1737_v39  ;;  %v4304_v43 = vld [vmem:[#allocation2 + $0x60] ss:$8 sps:$4 sm:$0xff]   ;;  %v1743_v17 = vrot.slane %v1741_v45, 1  ;;  %v1623_v50 = vld [vmem:[#allocation2 + $0x30] sm:$0x1f]  ;;  %v1751_v53 = vor.u32 %v1750_v42, %v1746_v48  ;;  %v1755_v6 = vshll.u32 %v1620_v51, 16 }
 0x23b   : > { %v4307_v1 = vld [vmem:[#allocation9 + $0x230] sm:$0xff]   ;;  %v1622_v56 = vld [vmem:[#allocation2 + $0x28] sm:$0x1f]  ;;  %v1776_v57 = vshll.u32 %v1623_v50, 16  ;;  %v1764_v63 = vrot.slane %v1762_v54, 1  ;;  %v1774_v7 = vshrl.u32 %v1623_v50, 16 }
 0x23c   : > { %3897 = vmatpush3.bf16.msra.mxu1 %v4292_v10  ;;  %3998 = vmatpush3.bf16.msra.mxu0 %v4291_v3  ;;  %v1744_v58 = vor.u32 %v1743_v17, %v1739_v52  ;;  %v4306_v12 = vld [vmem:[#allocation2 + $0x108] ss:$8 sps:$4 sm:$0xff]   ;;  %v1769_v59 = vshll.u32 %v1622_v56, 16  ;;  %v4308_v60 = vld [vmem:[#allocation2 + $0x18] ss:$8 sps:$4 sm:$0xff]   ;;  %v1757_v2 = vrot.slane %v1755_v6, 1 }
 0x23d   : > { %3898 = vmatprep.subr.bf16.mxu1 %v4294_v14  ;;  %3999 = vmatprep.subr.bf16.mxu0 %v4295_v15  ;;  %v4310_v62 = vld [vmem:[#allocation9 + $0x238] sm:$0xff]   ;;  %v4309_v0 = vld [vmem:[#allocation2 + $0x70] ss:$8 sps:$4 sm:$0xff]   ;;  %v1778_v9 = vrot.slane %v1776_v57, 1  ;;  %v1760_v3 = vshrl.u32 %v1621_v47, 16  ;;  %v1753_v46 = vshrl.u32 %v1620_v51, 16 }
 0x23e   : > { %2740 = vmatmul.mubr.bf16.gmra.mrb[40].mxu0 %v4293_v22  ;;  %v3542_v61 = vcombine.low %v1744_v58, %v1751_v53  ;;  %v1625_v32 = vld [vmem:[#allocation2 + $0x40] sm:$0x1f]  ;;  %v1771_v4 = vrot.slane %v1769_v59, 1  ;;  %v1624_v44 = vld [vmem:[#allocation2 + $0x38] sm:$0x1f]  ;;  %v1767_v11 = vshrl.u32 %v1622_v56, 16 }
 0x23f   : > { %2691 = vmatmul.mubr.bf16.gmra.mrb[24].mxu1 %v3563_v28  ;;  %2747 = vmatprep.mubr.bf16.mxu0 %v3557_v29  ;;  %v1765_v8 = vor.u32 %v1764_v63, %v1760_v3  ;;  %v1790_v10 = vshll.u32 %v1625_v32, 16  ;;  %v1779_v13 = vor.u32 %v1778_v9, %v1774_v7  ;;  %v1758_v14 = vor.u32 %v1757_v2, %v1753_v46  ;;  %v4311_v19 = vld [vmem:[#allocation2 + $0x28] ss:$8 sps:$4 sm:$0xff]   ;;  %v4313_v16 = vld [vmem:[#allocation2 + $0x38] ss:$8 sps:$4 sm:$0xff]  }
 0x240   : > { %3899 = vmatpush3.bf16.msra.mxu1 %v4296_v23  ;;  %4000 = vmatpush3.bf16.msra.mxu0 %v4295_v15  ;;  %v1783_v15 = vshll.u32 %v1624_v44, 16  ;;  %v1772_v18 = vor.u32 %v1771_v4, %v1767_v11  ;;  %v4312_v22 = vld [vmem:[#allocation2 + $0x80] ss:$8 sps:$4 sm:$0xff]   ;;  %v1788_v25 = vshrl.u32 %v1625_v32, 16  ;;  %v1781_v27 = vshrl.u32 %v1624_v44, 16  ;;  %v4314_v31 = vld [vmem:[#allocation12] sm:$0xff]  }
 0x241   : > { %2796 = vmatprep.mubr.bf16.mxu1 %v4297_v33  ;;  %3900 = vmatprep.subr.bf16.mxu1 %v4298_v30  ;;  %v3551_v55 = vcombine.low %v1758_v14, %v1765_v8  ;;  %v1792_v20 = vrot.slane %v1790_v10, 1  ;;  %v4316_v37 = vld [vmem:[#allocation12 + $0x10] sm:$0xff]   ;;  %v4317_v33 = vld [vmem:[#allocation12 + $0x18] sm:$0xff]   ;;  %v4319_v35 = vld [vmem:[#allocation12 + $0x28] sm:$0xff]  }
 0x242   : > { %4001 = vmatprep.subr.bf16.mxu0 %v4299_v24  ;;  %v3560_v21 = vcombine.low %v1772_v18, %v1779_v13  ;;  %v1785_v23 = vrot.slane %v1783_v15, 1  ;;  %v4321_v38 = vld [vmem:[#allocation12 + $0x38] sm:$0xff]   ;;  %v5290_v39 = vld [vmem:[#allocation15] sm:$0xff]  }
 0x243   : > { %v1793_v28 = vor.u32 %v1792_v20, %v1788_v25  ;;  %v5293_v51 = vld [vmem:[#allocation11] ss:$0 sm:$0xff] }
 0x244   : > { %3901 = vmatpush3.bf16.msra.mxu1 %v4300_v34  ;;  %4002 = vmatpush3.bf16.msra.mxu0 %v4299_v24  ;;  %v1786_v29 = vor.u32 %v1785_v23, %v1781_v27  ;;  %v4315_v24 = vld [vmem:[#allocation12 + $0x8] sm:$0xff]   ;;  %v4318_v34 = vld [vmem:[#allocation12 + $0x20] sm:$0xff]  }
 0x245   : > { %4003 = vmatprep.subr.bf16.mxu0 %v4302_v36  ;;  %4019 = vmatprep.subr.bf16.mxu1 %v4314_v31 }
 0x246   : > { %2748 = vmatmul.mubr.bf16.gmra.mrb[44].mxu0 %v4301_v41  ;;  %v3569_v30 = vcombine.low %v1786_v29, %v1793_v28 }
 0x247   : > { %2755 = vmatprep.mubr.bf16.mxu0 %v3566_v49  ;;  %2797 = vmatmul.mubr.bf16.vlgmr.msra.gmra.mrb[28].mxu1 %v4303_v5 }
 0x248   : > { %4004 = vmatpush3.bf16.msra.mxu0 %v4302_v36  ;;  %2804 = vmatprep.mubr.bf16.mxu1 %v4304_v43  ;;  %v4320_v36 = vld [vmem:[#allocation12 + $0x30] sm:$0xff]  }
 0x249   : > { %4005 = vmatprep.subr.bf16.mxu0 %v4305_v26  ;;  %4020 = vmatpush3.bf16.msra.mxu1 %v4314_v31 }
 0x24a   : > { %4021 = vmatprep.subr.bf16.mxu1 %v4315_v24 }
 0x24c   : > { %4006 = vmatpush3.bf16.msra.mxu0 %v4305_v26 }
 0x24d   : > { %4007 = vmatprep.subr.bf16.mxu0 %v4307_v1  ;;  %4022 = vmatpush3.bf16.msra.mxu1 %v4315_v24 }
 0x24e   : > { %2756 = vmatmul.mubr.bf16.gmra.mrb[48].mxu0 %v4306_v12  ;;  %4023 = vmatprep.subr.bf16.mxu1 %v4316_v37 }
 0x24f   : > { %2805 = vmatmul.mubr.bf16.gmra.mrb[32].mxu1 %v4308_v60  ;;  %4011 = vmatprep.mubr.bf16.mxu0 %v3542_v61 }
 0x250   : > { %4008 = vmatpush3.bf16.msra.mxu0 %v4307_v1  ;;  %2812 = vmatprep.mubr.bf16.mxu1 %v4309_v0 }
 0x251   : > { %4009 = vmatprep.subr.bf16.mxu0 %v4310_v62  ;;  %4024 = vmatpush3.bf16.msra.mxu1 %v4316_v37 }
 0x252   : > { %4025 = vmatprep.subr.bf16.mxu1 %v4317_v33 }
 0x254   : > { %4010 = vmatpush3.bf16.msra.mxu0 %v4310_v62 }
 0x255   : > { %4026 = vmatpush3.bf16.msra.mxu1 %v4317_v33 }
 0x256   : > { %4027 = vmatprep.subr.bf16.mxu1 %v4318_v34 }
 0x257   : > { %4012 = vmatmul.mubr.bf16.vlgmr.msra.gmra.mrb[52].mxu0 %v3551_v55  ;;  %2813 = vmatmul.mubr.bf16.gmra.mrb[36].mxu1 %v4311_v19 }
 0x258   : > { %4015 = vmatprep.mubr.bf16.mxu0 %v3560_v21  ;;  %2820 = vmatprep.mubr.bf16.mxu1 %v4312_v22 }
 0x259   : > { %4028 = vmatpush3.bf16.msra.mxu1 %v4318_v34 }
 0x25a   : > { %4029 = vmatprep.subr.bf16.mxu1 %v4319_v35 }
 0x25d   : > { %4030 = vmatpush3.bf16.msra.mxu1 %v4319_v35 }
 0x25e   : > { %4031 = vmatprep.subr.bf16.mxu1 %v4320_v36 }
 0x25f   : > { %4016 = vmatmul.mubr.bf16.gmra.mrb[56].mxu0 %v3569_v30  ;;  %2821 = vmatmul.mubr.bf16.gmra.mrb[40].mxu1 %v4313_v16 }
 0x261   : > { %4032 = vmatpush3.bf16.msra.mxu1 %v4320_v36 }
 0x262   : > { %4033 = vmatprep.subr.bf16.mxu1 %v4321_v38 }
 0x265   : > { %4034 = vmatpush3.bf16.msra.mxu1 %v4321_v38 }
 0x266   : > { %4043 = vmatprep.subr.bf16.mxu1 %v5290_v39 }
 0x2e9   : > { %v3782_v40 = vpop.f32.mrb[20].mxu0 }
 0x2ea   : > { %v3783_v41 = vpop.f32.mrb[21].mxu0 }
 0x2eb   : > { %v3784_v45 = vadd.f32 %v3783_v41, %v3782_v40  ;;  %v3785_v49 = vpop.f32.mrb[22].mxu0 }
 0x2ec   : > { %v3786_v5 = vpop.f32.mrb[23].mxu0 }
 0x2ed   : > { %v3787_v26 = vadd.f32 %v3786_v5, %v3785_v49  ;;  %v2604_v58 = vadd.f32 %v3784_v45, %v5293_v51 }
 0x2ef   : > { %v2607_v62 = vadd.f32 %v3787_v26, %v5293_v51 }
 0x2f1   : > { %v3788_v42 = vpop.f32.mrb[24].mxu0 }
 0x2f2   : > { %v3789_v43 = vpop.f32.mrb[25].mxu0 }
 0x2f3   : > { %v3790_v47 = vadd.f32 %v3789_v43, %v3788_v42  ;;  %v3791_v17 = vpop.f32.mrb[26].mxu0 }
 0x2f4   : > { %v3792_v48 = vpop.f32.mrb[27].mxu0 }
 0x2f5   : > { %v3793_v50 = vadd.f32 %v3792_v48, %v3791_v17  ;;  %v2612_v46 = vadd.f32 %v3790_v47, %v5293_v51 }
 0x2f7   : > { %v2615_v15 = vadd.f32 %v3793_v50, %v5293_v51 }
 0x2f9   : > { %v3794_v1 = vpop.f32.mrb[28].mxu0 }
 0x2fa   : > { %v3795_v52 = vpop.f32.mrb[29].mxu0  ;;  %v3822_v53 = vpop.f32.mrb[12].mxu1 }
 0x2fb   : > { %v3796_v54 = vadd.f32 %v3795_v52, %v3794_v1  ;;  %v3797_v56 = vpop.f32.mrb[30].mxu0  ;;  %v3823_v57 = vpop.f32.mrb[13].mxu1 }
 0x2fc   : > { %v3824_v6 = vadd.f32 %v3823_v57, %v3822_v53  ;;  %v3798_v12 = vpop.f32.mrb[31].mxu0  ;;  %v3825_v59 = vpop.f32.mrb[14].mxu1 }
 0x2fd   : > { %v3799_v60 = vadd.f32 %v3798_v12, %v3797_v56  ;;  %v3826_v61 = vpop.f32.mrb[15].mxu1  ;;  %v2620_v28 = vadd.f32 %v3796_v54, %v5293_v51 }
 0x2fe   : > { %v2669_v63 = vadd.f32 %v3824_v6, %v2604_v58  ;;  %v3827_v0 = vadd.f32 %v3826_v61, %v3825_v59 }
 0x2ff   : > { %v2623_v33 = vadd.f32 %v3799_v60, %v5293_v51 }
 0x300   : > { %v2672_v9 = vadd.f32 %v3827_v0, %v2607_v62 }
 0x301   : > { %v3800_v32 = vpop.f32.mrb[32].mxu0 }
 0x302   : > { %v3801_v2 = vpop.f32.mrb[33].mxu0  ;;  %v3828_v3 = vpop.f32.mrb[16].mxu1 }
 0x303   : > { %v3802_v4 = vadd.f32 %v3801_v2, %v3800_v32  ;;  %v3803_v7 = vpop.f32.mrb[34].mxu0  ;;  %v3829_v44 = vpop.f32.mrb[17].mxu1 }
 0x304   : > { %v3830_v8 = vadd.f32 %v3829_v44, %v3828_v3  ;;  %v3804_v10 = vpop.f32.mrb[35].mxu0  ;;  %v3831_v11 = vpop.f32.mrb[18].mxu1 }
 0x305   : > { %v3805_v13 = vadd.f32 %v3804_v10, %v3803_v7  ;;  %v3832_v14 = vpop.f32.mrb[19].mxu1  ;;  %v2628_v42 = vadd.f32 %v3802_v4, %v5293_v51 }
 0x306   : > { %v2677_v18 = vadd.f32 %v3830_v8, %v2612_v46  ;;  %v3833_v55 = vadd.f32 %v3832_v14, %v3831_v11 }
 0x307   : > { %v2631_v52 = vadd.f32 %v3805_v13, %v5293_v51 }
 0x308   : > { %v2680_v19 = vadd.f32 %v3833_v55, %v2615_v15 }
 0x309   : > { %v3862_v20 = vpop.f32.mrb[36].mxu0 }
 0x30a   : > { %v3834_v21 = vpop.f32.mrb[20].mxu1  ;;  %v3863_v22 = vpop.f32.mrb[37].mxu0 }
 0x30b   : > { %v3864_v23 = vadd.f32 %v3863_v22, %v3862_v20  ;;  %v3835_v25 = vpop.f32.mrb[21].mxu1  ;;  %v3865_v27 = vpop.f32.mrb[38].mxu0 }
 0x30c   : > { %v3836_v29 = vadd.f32 %v3835_v25, %v3834_v21  ;;  %v3837_v30 = vpop.f32.mrb[22].mxu1  ;;  %v3866_v16 = vpop.f32.mrb[39].mxu0 }
 0x30d   : > { %v2734_v31 = vadd.f32 %v3864_v23, %v2669_v63  ;;  %v3867_v24 = vadd.f32 %v3866_v16, %v3865_v27  ;;  %v3838_v37 = vpop.f32.mrb[23].mxu1 }
 0x30e   : > { %v2685_v34 = vadd.f32 %v3836_v29, %v2620_v28  ;;  %v3839_v35 = vadd.f32 %v3838_v37, %v3837_v30 }
 0x30f   : > { %v2737_v36 = vadd.f32 %v3867_v24, %v2672_v9 }
 0x310   : > { %v2688_v38 = vadd.f32 %v3839_v35, %v2623_v33 }
 0x311   : > { %v3868_v40 = vpop.f32.mrb[40].mxu0 }
 0x312   : > { %v3840_v41 = vpop.f32.mrb[24].mxu1  ;;  %v3869_v45 = vpop.f32.mrb[41].mxu0 }
 0x313   : > { %v3870_v49 = vadd.f32 %v3869_v45, %v3868_v40  ;;  %v3841_v5 = vpop.f32.mrb[25].mxu1  ;;  %v3871_v26 = vpop.f32.mrb[42].mxu0 }
 0x314   : > { %v3842_v43 = vadd.f32 %v3841_v5, %v3840_v41  ;;  %v3843_v47 = vpop.f32.mrb[26].mxu1  ;;  %v3872_v17 = vpop.f32.mrb[43].mxu0 }
 0x315   : > { %v2742_v48 = vadd.f32 %v3870_v49, %v2677_v18  ;;  %v3873_v50 = vadd.f32 %v3872_v17, %v3871_v26  ;;  %v3844_v1 = vpop.f32.mrb[27].mxu1 }
 0x316   : > { %v2693_v53 = vadd.f32 %v3842_v43, %v2628_v42  ;;  %v3845_v54 = vadd.f32 %v3844_v1, %v3843_v47 }
 0x317   : > { %v2745_v56 = vadd.f32 %v3873_v50, %v2680_v19 }
 0x318   : > { %v2696_v57 = vadd.f32 %v3845_v54, %v2631_v52 }
 0x319   : > { %v3874_v58 = vpop.f32.mrb[44].mxu0 }
 0x31a   : > { %v3875_v6 = vpop.f32.mrb[45].mxu0  ;;  %v3902_v12 = vpop.f32.mrb[28].mxu1 }
 0x31b   : > { %v3876_v59 = vadd.f32 %v3875_v6, %v3874_v58  ;;  %v3877_v60 = vpop.f32.mrb[46].mxu0  ;;  %v3903_v61 = vpop.f32.mrb[29].mxu1 }
 0x31c   : > { %v3904_v62 = vadd.f32 %v3903_v61, %v3902_v12  ;;  %v3878_v63 = vpop.f32.mrb[47].mxu0  ;;  %v3905_v0 = vpop.f32.mrb[30].mxu1 }
 0x31d   : > { %v2750_v9 = vadd.f32 %v3876_v59, %v2685_v34  ;;  %v3879_v32 = vadd.f32 %v3878_v63, %v3877_v60  ;;  %v3906_v2 = vpop.f32.mrb[31].mxu1 }
 0x31e   : > { %v3907_v3 = vadd.f32 %v3906_v2, %v3905_v0  ;;  %v2799_v4 = vadd.f32 %v3904_v62, %v2734_v31 }
 0x31f   : > { %v2753_v7 = vadd.f32 %v3879_v32, %v2688_v38 }
 0x320   : > { %v2802_v51 = vadd.f32 %v3907_v3, %v2737_v36  ;;  %v4323_v3 = vld [vmem:[%s5034_s28 + $0xd8] ss:$8 sps:$4 sm:$0xff]  }
 0x321   : > { %v3880_v44 = vpop.f32.mrb[48].mxu0 }
 0x322   : > { %v3881_v46 = vpop.f32.mrb[49].mxu0  ;;  %v3908_v8 = vpop.f32.mrb[32].mxu1 }
 0x323   : > { %v3882_v10 = vadd.f32 %v3881_v46, %v3880_v44  ;;  %v3883_v11 = vpop.f32.mrb[50].mxu0  ;;  %v3909_v13 = vpop.f32.mrb[33].mxu1  ;;  %v3642_v44 = vld [vmem:[#allocation14] ss:$0 sm:$0xff] }
 0x324   : > { %v3910_v14 = vadd.f32 %v3909_v13, %v3908_v8  ;;  %v3884_v15 = vpop.f32.mrb[51].mxu0  ;;  %v3911_v18 = vpop.f32.mrb[34].mxu1  ;;  %v3668_v8 = vld [vmem:[#allocation17] ss:$0 sm:$0xff] }
 0x325   : > { %v2758_v55 = vadd.f32 %v3882_v10, %v2693_v53  ;;  %v3885_v19 = vadd.f32 %v3884_v15, %v3883_v11  ;;  %v3912_v20 = vpop.f32.mrb[35].mxu1 }
 0x326   : > { %v3913_v21 = vadd.f32 %v3912_v20, %v3911_v18  ;;  %v2807_v22 = vadd.f32 %v3910_v14, %v2742_v48 }
 0x327   : > { %v2761_v23 = vadd.f32 %v3885_v19, %v2696_v57 }
 0x328   : > { %v2810_v25 = vadd.f32 %v3913_v21, %v2745_v56 }
 0x32a   : > { %v4013_v27 = vpop.f32.mrb[52].mxu0  ;;  %v3914_v28 = vpop.f32.mrb[36].mxu1 }
 0x32b   : > { %v2872_v29 = vadd.f32 %v4013_v27, %v2807_v22  ;;  %v2863_v30 = vpop.f32.mrb[53].mxu0  ;;  %v3915_v16 = vpop.f32.mrb[37].mxu1 }
 0x32c   : > { %v2864_v31 = vadd.f32 %v2863_v30, %v2799_v4  ;;  %v3916_v24 = vadd.f32 %v3915_v16, %v3914_v28  ;;  %v4014_v37 = vpop.f32.mrb[54].mxu0  ;;  %v3917_v33 = vpop.f32.mrb[38].mxu1 }
 0x32d   : > { %v2875_v34 = vadd.f32 %v4014_v37, %v2810_v25  ;;  %v2866_v35 = vpop.f32.mrb[55].mxu0  ;;  %v3918_v36 = vpop.f32.mrb[39].mxu1  ;;  %v2896_v45 = vmax.f32 %v2872_v29, 0.0 }
 0x32e   : > { %v2867_v38 = vadd.f32 %v2866_v35, %v2802_v51  ;;  %v3919_v40 = vadd.f32 %v3918_v36, %v3917_v33  ;;  %v2815_v41 = vadd.f32 %v3916_v24, %v2750_v9  ;;  %v2894_v5 = vmax.f32 %v2864_v31, 0.0  ;;  %v4325_v51 = vld [vmem:[%s5034_s28 + $0xf8] ss:$8 sps:$4 sm:$0xff]  }
 0x32f   : > { %v2897_v49 = vmax.f32 %v2875_v34, 0.0 }
 0x330   : > { %v2895_v26 = vmax.f32 %v2867_v38, 0.0  ;;  %v2818_v42 = vadd.f32 %v3919_v40, %v2753_v7  ;;  %v4324_v7 = vld [vmem:[%s5034_s28 + $0xe8] ss:$8 sps:$4 sm:$0xff]  }
 0x331   : > { %v2903_v43 = vpack.c.bf16 %v2897_v49, %v2896_v45 }
 0x332   : > { %v2902_v47 = vpack.c.bf16 %v2895_v26, %v2894_v5  ;;  %v4017_v17 = vpop.f32.mrb[56].mxu0  ;;  %v3920_v48 = vpop.f32.mrb[40].mxu1 }
 0x333   : > { %v2879_v50 = vpop.f32.mrb[57].mxu0  ;;  %v3921_v1 = vpop.f32.mrb[41].mxu1 }
 0x334   : > { %v2880_v52 = vadd.f32 %v2879_v50, %v2815_v41  ;;  %v3922_v53 = vadd.f32 %v3921_v1, %v3920_v48  ;;  %v4018_v54 = vpop.f32.mrb[58].mxu0  ;;  %4035 = vmatprep.mubr.bf16.mxu1 %v2902_v47  ;;  %v3923_v56 = vpop.f32.mrb[42].mxu1 }
 0x335   : > { %v2882_v57 = vpop.f32.mrb[59].mxu0  ;;  %4036 = vmatmul.mubr.bf16.vlgmr.msra.gmra.mrb[44].mxu1 %v2903_v43  ;;  %v3924_v58 = vpop.f32.mrb[43].mxu1 }
 0x336   : > { %v2823_v6 = vadd.f32 %v3922_v53, %v2758_v55  ;;  %v2883_v12 = vadd.f32 %v2882_v57, %v2818_v42  ;;  %v3925_v59 = vadd.f32 %v3924_v58, %v3923_v56  ;;  %4044 = vmatpush3.bf16.msra.mxu1 %v5290_v39  ;;  %v2898_v60 = vmax.f32 %v2880_v52, 0.0  ;;  %v4326_v39 = vld [vmem:[%s5034_s28 + $0x108] ss:$8 sps:$4 sm:$0xff]  }
 0x338   : > { %v2888_v61 = vadd.f32 %v4017_v17, %v2823_v6  ;;  %v2899_v62 = vmax.f32 %v2883_v12, 0.0  ;;  %v2826_v63 = vadd.f32 %v3925_v59, %v2761_v23 }
 0x33a   : > { %v2904_v0 = vpack.c.bf16 %v2899_v62, %v2898_v60  ;;  %v2891_v9 = vadd.f32 %v4018_v54, %v2826_v63  ;;  %v2900_v32 = vmax.f32 %v2888_v61, 0.0 }
 0x33c   : > { %v2901_v2 = vmax.f32 %v2891_v9, 0.0  ;;  %4039 = vmatprep.mubr.bf16.mxu1 %v2904_v0 }
 0x33e   : > { %v2905_v4 = vpack.c.bf16 %v2901_v2, %v2900_v32 }
 0x340   : > { %4040 = vmatmul.mubr.bf16.gmra.mrb[48].mxu1 %v2905_v4 }
 0x341   : > { %4045 = vmatprep.mubr.msk.bf16.mxu1 %vm657_vm2, %v4323_v3 }
 0x348   : > { %4046 = vmatmul.mubr.msk.bf16.vlgmr.msra.gmra.mrb[44].mxu1 %vm657_vm2, %v4324_v7 }
 0x349   : > { %4049 = vmatprep.mubr.msk.bf16.mxu1 %vm657_vm2, %v4325_v51 }
 0x350   : > { %4050 = vmatmul.mubr.msk.bf16.gmra.mrb[48].mxu1 %vm657_vm2, %v4326_v39 }
 0x41b   : > { %v4047_v46 = vpop.f32.mrb[44].mxu1 }
 0x41c   : > { %v4055_v10 = vadd.f32 %v4047_v46, %v3642_v44  ;;  %v3124_v11 = vpop.f32.mrb[45].mxu1 }
 0x41d   : > { %v4056_v13 = vadd.f32 %v3642_v44, %v3124_v11  ;;  %v4048_v14 = vpop.f32.mrb[46].mxu1 }
 0x41e   : > { %v3172_v15 = vadd.f32 %v4055_v10, %v3668_v8  ;;  %v4057_v18 = vadd.f32 %v4048_v14, %v3642_v44  ;;  %v3127_v55 = vpop.f32.mrb[47].mxu1 }
 0x41f   : > { %v3170_v19 = vadd.f32 %v4056_v13, %v3668_v8  ;;  %v4058_v20 = vadd.f32 %v3642_v44, %v3127_v55 }
 0x420   : > { %v3173_v21 = vadd.f32 %v4057_v18, %v3668_v8  ;;  %v3180_v23 = vmax.f32 %v3172_v15, 0.0 }
 0x421   : > { %v3171_v22 = vadd.f32 %v4058_v20, %v3668_v8  ;;  %v3178_v27 = vmax.f32 %v3170_v19, 0.0 }
 0x422   : > { %v3181_v25 = vmax.f32 %v3173_v21, 0.0 }
 0x423   : > { %v3179_v28 = vmax.f32 %v3171_v22, 0.0  ;;  %v4051_v29 = vpop.f32.mrb[48].mxu1 }
 0x424   : > { %v3731_v30 = vpack.c.bf16 %v3181_v25, %v3180_v23  ;;  %v4059_v16 = vadd.f32 %v4051_v29, %v3642_v44  ;;  %v3140_v31 = vpop.f32.mrb[49].mxu1 }
 0x425   : > { %v3726_v24 = vpack.c.bf16 %v3179_v28, %v3178_v27  ;;  %v4060_v37 = vadd.f32 %v3642_v44, %v3140_v31  ;;  %v4052_v33 = vpop.f32.mrb[50].mxu1 }
 0x426   : > { %3743 = vst [vmem:[%s459_s18 + $0x8] sm:$0xff] %v3731_v30   ;;  %v3176_v34 = vadd.f32 %v4059_v16, %v3668_v8  ;;  %v4061_v35 = vadd.f32 %v4052_v33, %v3642_v44  ;;  %v3143_v36 = vpop.f32.mrb[51].mxu1 }
 0x427   : > { %3727 = vst [vmem:[%s459_s18] sm:$0xff] %v3726_v24   ;;  %v3174_v38 = vadd.f32 %v4060_v37, %v3668_v8  ;;  %v4062_v40 = vadd.f32 %v3642_v44, %v3143_v36 }
 0x428   : > { %v3177_v41 = vadd.f32 %v4061_v35, %v3668_v8  ;;  %v3184_v49 = vmax.f32 %v3176_v34, 0.0 }
 0x429   : > { %v3175_v45 = vadd.f32 %v4062_v40, %v3668_v8  ;;  %v3182_v26 = vmax.f32 %v3174_v38, 0.0 }
 0x42a   : > { %v3185_v5 = vmax.f32 %v3177_v41, 0.0 }
 0x42b   : > { %v3183_v42 = vmax.f32 %v3175_v45, 0.0 }
 0x42c   : > { %v3741_v43 = vpack.c.bf16 %v3185_v5, %v3184_v49 }
 0x42d   : > { %v3736_v47 = vpack.c.bf16 %v3183_v42, %v3182_v26 }
 0x42e   : > { %3745 = vst [vmem:[%s459_s18 + $0x18] sm:$0xff] %v3741_v43  }
 0x42f   : > { %3744 = vst [vmem:[%s459_s18 + $0x10] sm:$0xff] %v3736_v47  }
 0x430   : > { %4594 = shalt.err (!%p4591_p10)
}
 0x431   : > { %s4595_s1 = scalar_lea.hbm %s5319_s27, 512  ;;  %s4599_s18 = scalar_lea.hbm %s5407_s21, 1024 }
 0x432   : > { %p4596_p11 = scmp.ne.s32.totalorder %s5319_s27, %s4595_s1  ;;  %p4600_p7 = scmp.lt.u32.totalorder %s5319_s27, %s5407_s21 }
 0x433   : > { %p4601_p5 = scmp.lt.u32.totalorder %s4599_s18, %s4595_s1  ;;  %p4603_p12 = scmp.lt.u32.totalorder %s4595_s1, %s5319_s27 }
 0x434   : > { %p4597_p3 = pnand %p4596_p11, %p5408_p1 }
 0x435   : > { %p4602_p9 = por %p4601_p5, %p4600_p7 }
 0x436   : > { %p4598_p6 = pneg %p4597_p3 }
 0x437   : > { %p4604_p13 = por %p4603_p12, %p4602_p9 }
 0x439   : > { %p4605_p0 = pnand %p4604_p13, %p4598_p6 }
 0x43b   : > { %4608 = shalt.err (!%p4605_p0)
}
 0x43c   : > { %s4678_s29 = smov 64   ;;  %s4679_s15 = smov 4  }
 0x43d   : > { %4108 = dma.vmem_to_hbm [thread:$0]  (%p5408_p1), %s5314_s26, 512, %s5319_s27, %s3227_s2, %s4678_s29, %s4678_s29, %s4679_s15  }
 0x43e PF: > { %s3255_s17 = sand.u32 1, %s4651_s30   ;;  %p5409_p2 = scmp.ne.s32.totalorder %s5390_s23, 0 }
 0x43f   : > { %p5410_p8 = scmp.ge.s32.totalorder %s4663_s12, 2  ;;  %s3256_s20 = scalar_lea.sflag [#allocation5], %s3255_s17 }
 0x441   : > { %p4140_p4 = pnand %p5410_p8, %p5409_p2 }
 0x443   : > { %4646 = dma.done.wait (!%p4140_p4), %s3256_s20, 512  }
 0x444   : > { %4648 = vsyncadd (!%p4140_p4), %s3256_s20, 4294966784  ;;  %p26_p10 = scmp.ge.s32.totalorder %s4954_s19, 4   ;;  %s5411_s30 = smov %s4655_s10 }
 0x445   : > { %s5412_s10 = smov %s4659_s11  ;;  %s5413_s11 = smov %s4965_s13 }
 0x446   : > { %s5414_s12 = smov %s4954_s19  ;;  %28 = sbr.rel (!%p26_p10) target bundleno = 13 (0xd), region = 142 }
 0x44d   :  { %3261 = vsyncpa [#allocation4], 1 }
 0x44e   :  { %3263 = vsyncpa [#allocation4 + $0x1], 1 }
 0x44f   :  { %3264 = vsyncpa [#allocation7], 1 }
 0x450   :  { %3265 = vsyncpa [#allocation10], 1 }
 0x451   :  { %3266 = vsyncpa [#allocation13], 1 }
 0x452   :  { %3267 = vsyncpa [#allocation16], 1 }
 0x453   :  { %3268 = vsyncpa [#allocation5], 1 }
 0x454   :  { %3270 = vsyncpa [#allocation5 + $0x1], 1 }

</bundles_post_ra>
